<compile_context>
chip_gen: v7x
topology: tpu7x:2x2x1
jax: 0.10.0
libtpu: 0.0.40
codegen_flags: <defaults>
</compile_context>

<pallas_src>
import jax
import jax.numpy as jnp
from jax import lax
from jax.experimental import pallas as pl
from jax.experimental.pallas import tpu as pltpu

# --- model / problem sizes (small, consistent with the module's forward) ---
VOCAB = 50        # vocab_size
VOCAB_PAD = 128   # vocab padded to one lane tile for the one-hot matmul
E = 32            # embedding_dim
H = 32            # hidden_size
C = 3             # CLASSES
B = 2             # batch
T = 8             # sequence length (x has shape (B, 1, T) so the .view() is valid)

_EPS = 1e-5       # nn.LayerNorm default eps


def _mxu_dot(a, b):
    # bf16 operands -> single-pass MXU; f32 accumulation. Vector math stays f32.
    return jnp.dot(a.astype(jnp.bfloat16), b.astype(jnp.bfloat16),
                   preferred_element_type=jnp.float32)


def _layer_norm(x, w, b):
    mu = jnp.mean(x, axis=-1, keepdims=True)
    var = jnp.mean((x - mu) ** 2, axis=-1, keepdims=True)
    return (x - mu) * lax.rsqrt(var + _EPS) * w + b


def lstm_model_kernel(ids_ref,                         # (T*B, 1) int32, row = t*B + b
                      emb_proj_ref,                    # (VOCAB_PAD, 4H) = emb @ fc1_w @ w_ih (zero-padded)
                      b_in_ref,                        # (1, 4H)  = fc1_b @ w_ih + b_ih + b_hh
                      w_hh_ref,                        # (H, 4H)
                      ln1_w_ref, ln1_b_ref,            # (1, H)
                      ln2_w_ref, ln2_b_ref,            # (1, 2H)
                      fc2_w_ref, fc2_b_ref,            # (H, 2H), (1, 2H)
                      fc3_w_ref, fc3_b_ref,            # (2H, H), (1, H)
                      fc4_w_ref, fc4_b_ref,            # (H, C), (1, C)
                      out_ref,                         # (B, C)
                      gx_ref,                          # VMEM scratch (T*B, 4H) f32
                      hs_ref):                         # VMEM scratch (T*B, H)  f32
    # (1) Embedding gather + fc1 + LSTM input projection for ALL timesteps as ONE
    #     one-hot matmul (one VPU compare + one tiny MXU op, off the serial path).
    ids = ids_ref[...]                                                   # (T*B, 1)
    vocab_lane = lax.broadcasted_iota(jnp.int32, (T * B, VOCAB_PAD), 1)
    onehot = (vocab_lane == ids).astype(jnp.bfloat16)                    # (T*B, VOCAB_PAD)
    gx_ref[...] = _mxu_dot(onehot, emb_proj_ref[...]) + b_in_ref[...]    # (T*B, 4H)

    # (2) Hoisted per-lane activation constants. PyTorch gate order: i, f, g, o.
    #     Non-g lanes: sigmoid(x) = 0.5*tanh(0.5*x) + 0.5 ; g lanes: tanh(x).
    lane = lax.broadcasted_iota(jnp.int32, (B, 4 * H), 1)
    g_lanes = (lane >= 2 * H) & (lane < 3 * H)
    pre_scale = jnp.where(g_lanes, 1.0, 0.5)
    post_scale = jnp.where(g_lanes, 1.0, 0.5)
    post_bias = jnp.where(g_lanes, 0.0, 0.5)

    # (3) Recurrence, fully unrolled (T=8 static); one (B,H)@(H,4H) matmul + one
    #     tanh over the whole (B,4H) vreg + one tanh(c) per step.
    w_hh_bf = w_hh_ref[...].astype(jnp.bfloat16)
    h = jnp.zeros((B, H), jnp.float32)
    c = jnp.zeros((B, H), jnp.float32)
    for t in range(T):
        gates = gx_ref[pl.ds(t * B, B), :] + jnp.dot(
            h.astype(jnp.bfloat16), w_hh_bf, preferred_element_type=jnp.float32)
        th = jnp.tanh(gates * pre_scale)
        act = th * post_scale + post_bias
        i_g = act[:, 0:H]
        f_g = act[:, H:2 * H]
        g_g = act[:, 2 * H:3 * H]
        o_g = act[:, 3 * H:4 * H]
        c = f_g * c + i_g * g_g
        h = o_g * jnp.tanh(c)
        hs_ref[pl.ds(t * B, B), :] = h

    # (4) Post-LSTM head hoisted out of the recurrence, batched over T*B rows.
    #     (head is row-wise per timestep in the reference, so this is exact)
    y = hs_ref[...]                                                      # (T*B, H)
    y = _layer_norm(y, ln1_w_ref[...], ln1_b_ref[...])                   # dropout = id
    y = jnp.maximum(_mxu_dot(y, fc2_w_ref[...]) + fc2_b_ref[...], 0.0)
    y = _layer_norm(y, ln2_w_ref[...], ln2_b_ref[...])                   # dropout = id
    y = jnp.maximum(_mxu_dot(y, fc3_w_ref[...]) + fc3_b_ref[...], 0.0)
    y = _layer_norm(y, ln1_w_ref[...], ln1_b_ref[...])                   # module reuses layer_norm1

    # (5) fc4 is affine -> sum over time BEFORE the last matmul:
    #     sum_t (y_t @ W4 + b4) = (sum_t y_t) @ W4 + T * b4
    y_sum = y[0:B, :]
    for t in range(1, T):
        y_sum = y_sum + y[t * B:(t + 1) * B, :]
    out_ref[...] = _mxu_dot(y_sum, fc4_w_ref[...]) + float(T) * fc4_b_ref[...]


def fold_params(params):
    """One-time (parameter-load) f32 folding of fc1 + LSTM input path + embedding."""
    f32 = jnp.float32
    w_in = params["fc1_w"] @ params["w_ih"]                              # (E, 4H)
    b_in = params["fc1_b"] @ params["w_ih"] + params["b_lstm"]           # (1, 4H)
    emb_proj = params["emb"] @ w_in                                      # (VOCAB, 4H)
    emb_proj_pad = jnp.zeros((VOCAB_PAD, 4 * H), f32).at[:VOCAB, :].set(emb_proj)
    return dict(
        emb_proj=emb_proj_pad, b_in=b_in, w_hh=params["w_hh"],
        ln1_w=params["ln1_w"], ln1_b=params["ln1_b"],
        ln2_w=params["ln2_w"], ln2_b=params["ln2_b"],
        fc2_w=params["fc2_w"], fc2_b=params["fc2_b"],
        fc3_w=params["fc3_w"], fc3_b=params["fc3_b"],
        fc4_w=params["fc4_w"], fc4_b=params["fc4_b"],
    )


def lstm_model_forward(x_idx, folded):
    """x_idx: int32 (B, 1, T) token indices (matches the PyTorch forward's .view)."""
    ids = jnp.clip(x_idx[:, 0, :].astype(jnp.int32), 0, VOCAB - 1)       # (B, T), bounds-safe
    ids_tm = ids.T.reshape(T * B, 1)                                     # time-major, row = t*B + b
    vmem = pl.BlockSpec(memory_space=pltpu.MemorySpace.VMEM)
    out = pl.pallas_call(
        lstm_model_kernel,
        out_shape=jax.ShapeDtypeStruct((B, C), jnp.float32),
        in_specs=[vmem] * 14,
        out_specs=vmem,
        scratch_shapes=[pltpu.VMEM((T * B, 4 * H), jnp.float32),
                        pltpu.VMEM((T * B, H), jnp.float32)],
    )(
        ids_tm,
        folded["emb_proj"], folded["b_in"], folded["w_hh"],
        folded["ln1_w"], folded["ln1_b"],
        folded["ln2_w"], folded["ln2_b"],
        folded["fc2_w"], folded["fc2_b"],
        folded["fc3_w"], folded["fc3_b"],
        folded["fc4_w"], folded["fc4_b"],
    )
    return out


def lstm_model_reference(x_idx, params):
    """Pure-JAX f32 reference mirroring the PyTorch forward (eval mode)."""
    emb = params["emb"][x_idx[:, 0, :]]                       # (B, T, E)
    x = emb @ params["fc1_w"] + params["fc1_b"]               # (B, T, H)
    w_ih, w_hh, b = params["w_ih"], params["w_hh"], params["b_lstm"]

    def cell(carry, x_t):
        h, c = carry
        g = x_t @ w_ih + h @ w_hh + b
        i_g = jax.nn.sigmoid(g[:, 0:H])
        f_g = jax.nn.sigmoid(g[:, H:2 * H])
        g_g = jnp.tanh(g[:, 2 * H:3 * H])
        o_g = jax.nn.sigmoid(g[:, 3 * H:4 * H])
        c = f_g * c + i_g * g_g
        h = o_g * jnp.tanh(c)
        return (h, c), h

    init = (jnp.zeros((B, H), jnp.float32), jnp.zeros((B, H), jnp.float32))
    _, hs = lax.scan(cell, init, jnp.swapaxes(x, 0, 1))
    hs = jnp.swapaxes(hs, 0, 1)                               # (B, T, H)

    y = _layer_norm(hs, params["ln1_w"], params["ln1_b"])
    y = jax.nn.relu(y @ params["fc2_w"] + params["fc2_b"])
    y = _layer_norm(y, params["ln2_w"], params["ln2_b"])
    y = jax.nn.relu(y @ params["fc3_w"] + params["fc3_b"])
    y = _layer_norm(y, params["ln1_w"], params["ln1_b"])
    logits = y @ params["fc4_w"] + params["fc4_b"]            # (B, T, C)
    return logits.sum(axis=1)                                 # (B, C)


def init_params(key):
    ks = jax.random.split(key, 10)
    s = 0.1
    f32 = jnp.float32
    return dict(
        emb=jax.random.normal(ks[0], (VOCAB, E), f32),        # ~N(0,1) like nn.Embedding
        fc1_w=jax.random.normal(ks[1], (E, H), f32) * s,
        fc1_b=jax.random.normal(ks[2], (1, H), f32) * s,
        # LSTM: weights stored transposed (in, 4H); bias pre-summed = bias_ih + bias_hh
        w_ih=jax.random.normal(ks[3], (H, 4 * H), f32) * s,
        w_hh=jax.random.normal(ks[4], (H, 4 * H), f32) * s,
        b_lstm=jax.random.normal(ks[5], (1, 4 * H), f32) * s,
        ln1_w=jnp.ones((1, H), f32),
        ln1_b=jnp.zeros((1, H), f32),
        ln2_w=jnp.ones((1, 2 * H), f32),
        ln2_b=jnp.zeros((1, 2 * H), f32),
        fc2_w=jax.random.normal(ks[6], (H, 2 * H), f32) * s,
        fc2_b=jnp.zeros((1, 2 * H), f32),
        fc3_w=jax.random.normal(ks[7], (2 * H, H), f32) * s,
        fc3_b=jnp.zeros((1, H), f32),
        fc4_w=jax.random.normal(ks[8], (H, C), f32) * s,
        fc4_b=jax.random.normal(ks[9], (1, C), f32) * s,
    )


if __name__ == "__main__":
    key = jax.random.PRNGKey(0)
    pkey, xkey = jax.random.split(key)
    params = init_params(pkey)
    folded = fold_params(params)                              # one-time weight folding
    # x: (B, 1, T) integer token ids — matches out.view(B, T, H) in the PyTorch forward.
    x = jax.random.randint(xkey, (B, 1, T), 0, VOCAB, dtype=jnp.int32)

    out = jax.block_until_ready(lstm_model_forward(x, folded))
    ref = jax.block_until_ready(lstm_model_reference(x, params))

    assert out.shape == (B, C) and out.dtype == jnp.float32
    assert bool(jnp.all(jnp.isfinite(out)))
    # bf16 MXU operands in the kernel vs f32 reference -> loose tolerance
    assert bool(jnp.allclose(out, ref, rtol=1e-1, atol=1e-1)), (out, ref)
    print("KERNEL_OK")
</pallas_src>

<mosaic_0001>
module attributes {stable_mosaic.version = 11 : i64} {
  func.func @lstm_model_kernel(%arg0: memref<16x1xi32, #tpu.memory_space<vmem>>, %arg1: memref<128x128xf32, #tpu.memory_space<vmem>>, %arg2: memref<1x128xf32, #tpu.memory_space<vmem>>, %arg3: memref<32x128xf32, #tpu.memory_space<vmem>>, %arg4: memref<1x32xf32, #tpu.memory_space<vmem>>, %arg5: memref<1x32xf32, #tpu.memory_space<vmem>>, %arg6: memref<1x64xf32, #tpu.memory_space<vmem>>, %arg7: memref<1x64xf32, #tpu.memory_space<vmem>>, %arg8: memref<32x64xf32, #tpu.memory_space<vmem>>, %arg9: memref<1x64xf32, #tpu.memory_space<vmem>>, %arg10: memref<64x32xf32, #tpu.memory_space<vmem>>, %arg11: memref<1x32xf32, #tpu.memory_space<vmem>>, %arg12: memref<32x3xf32, #tpu.memory_space<vmem>>, %arg13: memref<1x3xf32, #tpu.memory_space<vmem>>, %arg14: memref<2x3xf32, #tpu.memory_space<vmem>>, %arg15: memref<16x128xf32, #tpu.memory_space<vmem>>, %arg16: memref<16x32xf32, #tpu.memory_space<vmem>>) attributes {dimension_semantics = [], scalar_prefetch = 0 : i64, scratch_operands = 2 : i64, tpu.core_type = #tpu.core_type<tc>} {
    %c0 = arith.constant 0 : index
    %c0_0 = arith.constant 0 : index
    %0 = vector.load %arg0[%c0, %c0_0] : memref<16x1xi32, #tpu.memory_space<vmem>>, vector<16x1xi32>
    %1 = tpu.iota {dimensions = array<i32: 1>} : vector<16x128xi32>
    %2 = vector.broadcast %0 : vector<16x1xi32> to vector<16x128xi32>
    %3 = arith.cmpi eq, %1, %2 : vector<16x128xi32>
    %4 = arith.extui %3 : vector<16x128xi1> to vector<16x128xi32>
    %5 = arith.sitofp %4 : vector<16x128xi32> to vector<16x128xf32>
    %6 = arith.truncf %5 : vector<16x128xf32> to vector<16x128xbf16>
    %c0_1 = arith.constant 0 : index
    %c0_2 = arith.constant 0 : index
    %7 = vector.load %arg1[%c0_1, %c0_2] : memref<128x128xf32, #tpu.memory_space<vmem>>, vector<128x128xf32>
    %8 = arith.truncf %7 : vector<128x128xf32> to vector<128x128xbf16>
    %cst = arith.constant dense<0.000000e+00> : vector<16x128xf32>
    %9 = tpu.matmul %6, %8, %cst {dimension_numbers = #tpu.dot_dimension_numbers<[1], [0], [0], [1], [0, 0, 1, 1], [], []>} : vector<16x128xbf16>, vector<128x128xbf16>, vector<16x128xf32> -> vector<16x128xf32>
    %c0_3 = arith.constant 0 : index
    %c0_4 = arith.constant 0 : index
    %10 = vector.load %arg2[%c0_3, %c0_4] : memref<1x128xf32, #tpu.memory_space<vmem>>, vector<1x128xf32>
    %11 = vector.broadcast %10 : vector<1x128xf32> to vector<16x128xf32>
    %12 = arith.addf %9, %11 : vector<16x128xf32>
    %c0_5 = arith.constant 0 : index
    %c0_6 = arith.constant 0 : index
    %13 = vector.load %arg15[%c0_5, %c0_6] : memref<16x128xf32, #tpu.memory_space<vmem>>, vector<16x128xf32>
    tpu.vector_store %arg15[%c0_5, %c0_6], %12 {strides = array<i32>} : memref<16x128xf32, #tpu.memory_space<vmem>>, vector<16x128xf32>,
    %14 = tpu.iota {dimensions = array<i32: 1>} : vector<2x128xi32>
    %c64_i32 = arith.constant 64 : i32
    %15 = vector.broadcast %c64_i32 : i32 to vector<2x128xi32>
    %16 = arith.cmpi sge, %14, %15 : vector<2x128xi32>
    %c96_i32 = arith.constant 96 : i32
    %17 = vector.broadcast %c96_i32 : i32 to vector<2x128xi32>
    %18 = arith.cmpi slt, %14, %17 : vector<2x128xi32>
    %19 = arith.andi %16, %18 : vector<2x128xi1>
    %cst_7 = arith.constant 1.000000e+00 : f32
    %cst_8 = arith.constant 5.000000e-01 : f32
    %20 = vector.broadcast %cst_7 : f32 to vector<2x128xf32>
    %21 = vector.broadcast %cst_8 : f32 to vector<2x128xf32>
    %22 = arith.select %19, %20, %21 : vector<2x128xi1>, vector<2x128xf32>
    %cst_9 = arith.constant 1.000000e+00 : f32
    %cst_10 = arith.constant 5.000000e-01 : f32
    %23 = vector.broadcast %cst_9 : f32 to vector<2x128xf32>
    %24 = vector.broadcast %cst_10 : f32 to vector<2x128xf32>
    %25 = arith.select %19, %23, %24 : vector<2x128xi1>, vector<2x128xf32>
    %cst_11 = arith.constant 0.000000e+00 : f32
    %cst_12 = arith.constant 5.000000e-01 : f32
    %26 = vector.broadcast %cst_11 : f32 to vector<2x128xf32>
    %27 = vector.broadcast %cst_12 : f32 to vector<2x128xf32>
    %28 = arith.select %19, %26, %27 : vector<2x128xi1>, vector<2x128xf32>
    %c0_13 = arith.constant 0 : index
    %c0_14 = arith.constant 0 : index
    %29 = vector.load %arg3[%c0_13, %c0_14] : memref<32x128xf32, #tpu.memory_space<vmem>>, vector<32x128xf32>
    %30 = arith.truncf %29 : vector<32x128xf32> to vector<32x128xbf16>
    %cst_15 = arith.constant 0.000000e+00 : f32
    %31 = vector.broadcast %cst_15 : f32 to vector<2x32xf32>
    %cst_16 = arith.constant 0.000000e+00 : f32
    %32 = vector.broadcast %cst_16 : f32 to vector<2x32xf32>
    %c0_17 = arith.constant 0 : index
    %c0_18 = arith.constant 0 : index
    %33 = vector.load %arg15[%c0_17, %c0_18] : memref<16x128xf32, #tpu.memory_space<vmem>>, vector<2x128xf32>
    %34 = arith.truncf %31 : vector<2x32xf32> to vector<2x32xbf16>
    %cst_19 = arith.constant dense<0.000000e+00> : vector<2x128xf32>
    %35 = tpu.matmul %34, %30, %cst_19 {dimension_numbers = #tpu.dot_dimension_numbers<[1], [0], [0], [1], [0, 0, 1, 1], [], []>} : vector<2x32xbf16>, vector<32x128xbf16>, vector<2x128xf32> -> vector<2x128xf32>
    %36 = arith.addf %33, %35 : vector<2x128xf32>
    %37 = arith.mulf %36, %22 : vector<2x128xf32>
    %38 = math.tanh %37 : vector<2x128xf32>
    %39 = arith.mulf %38, %25 : vector<2x128xf32>
    %40 = arith.addf %39, %28 : vector<2x128xf32>
    %41 = vector.extract_strided_slice %40 {offsets = [0, 0], sizes = [2, 32], strides = [1, 1]} : vector<2x128xf32> to vector<2x32xf32>
    %42 = vector.extract_strided_slice %40 {offsets = [0, 32], sizes = [2, 32], strides = [1, 1]} : vector<2x128xf32> to vector<2x32xf32>
    %43 = vector.extract_strided_slice %40 {offsets = [0, 64], sizes = [2, 32], strides = [1, 1]} : vector<2x128xf32> to vector<2x32xf32>
    %44 = vector.extract_strided_slice %40 {offsets = [0, 96], sizes = [2, 32], strides = [1, 1]} : vector<2x128xf32> to vector<2x32xf32>
    %45 = arith.mulf %42, %32 : vector<2x32xf32>
    %46 = arith.mulf %41, %43 : vector<2x32xf32>
    %47 = arith.addf %45, %46 : vector<2x32xf32>
    %48 = math.tanh %47 : vector<2x32xf32>
    %49 = arith.mulf %44, %48 : vector<2x32xf32>
    %c0_20 = arith.constant 0 : index
    %c0_21 = arith.constant 0 : index
    %50 = vector.load %arg16[%c0_20, %c0_21] : memref<16x32xf32, #tpu.memory_space<vmem>>, vector<2x32xf32>
    tpu.vector_store %arg16[%c0_20, %c0_21], %49 {strides = array<i32>} : memref<16x32xf32, #tpu.memory_space<vmem>>, vector<2x32xf32>,
    %c2 = arith.constant 2 : index
    %c0_22 = arith.constant 0 : index
    %51 = vector.load %arg15[%c2, %c0_22] : memref<16x128xf32, #tpu.memory_space<vmem>>, vector<2x128xf32>
    %52 = arith.truncf %49 : vector<2x32xf32> to vector<2x32xbf16>
    %cst_23 = arith.constant dense<0.000000e+00> : vector<2x128xf32>
    %53 = tpu.matmul %52, %30, %cst_23 {dimension_numbers = #tpu.dot_dimension_numbers<[1], [0], [0], [1], [0, 0, 1, 1], [], []>} : vector<2x32xbf16>, vector<32x128xbf16>, vector<2x128xf32> -> vector<2x128xf32>
    %54 = arith.addf %51, %53 : vector<2x128xf32>
    %55 = arith.mulf %54, %22 : vector<2x128xf32>
    %56 = math.tanh %55 : vector<2x128xf32>
    %57 = arith.mulf %56, %25 : vector<2x128xf32>
    %58 = arith.addf %57, %28 : vector<2x128xf32>
    %59 = vector.extract_strided_slice %58 {offsets = [0, 0], sizes = [2, 32], strides = [1, 1]} : vector<2x128xf32> to vector<2x32xf32>
    %60 = vector.extract_strided_slice %58 {offsets = [0, 32], sizes = [2, 32], strides = [1, 1]} : vector<2x128xf32> to vector<2x32xf32>
    %61 = vector.extract_strided_slice %58 {offsets = [0, 64], sizes = [2, 32], strides = [1, 1]} : vector<2x128xf32> to vector<2x32xf32>
    %62 = vector.extract_strided_slice %58 {offsets = [0, 96], sizes = [2, 32], strides = [1, 1]} : vector<2x128xf32> to vector<2x32xf32>
    %63 = arith.mulf %60, %47 : vector<2x32xf32>
    %64 = arith.mulf %59, %61 : vector<2x32xf32>
    %65 = arith.addf %63, %64 : vector<2x32xf32>
    %66 = math.tanh %65 : vector<2x32xf32>
    %67 = arith.mulf %62, %66 : vector<2x32xf32>
    %c2_24 = arith.constant 2 : index
    %c0_25 = arith.constant 0 : index
    %68 = vector.load %arg16[%c2_24, %c0_25] : memref<16x32xf32, #tpu.memory_space<vmem>>, vector<2x32xf32>
    tpu.vector_store %arg16[%c2_24, %c0_25], %67 {strides = array<i32>} : memref<16x32xf32, #tpu.memory_space<vmem>>, vector<2x32xf32>,
    %c4 = arith.constant 4 : index
    %c0_26 = arith.constant 0 : index
    %69 = vector.load %arg15[%c4, %c0_26] : memref<16x128xf32, #tpu.memory_space<vmem>>, vector<2x128xf32>
    %70 = arith.truncf %67 : vector<2x32xf32> to vector<2x32xbf16>
    %cst_27 = arith.constant dense<0.000000e+00> : vector<2x128xf32>
    %71 = tpu.matmul %70, %30, %cst_27 {dimension_numbers = #tpu.dot_dimension_numbers<[1], [0], [0], [1], [0, 0, 1, 1], [], []>} : vector<2x32xbf16>, vector<32x128xbf16>, vector<2x128xf32> -> vector<2x128xf32>
    %72 = arith.addf %69, %71 : vector<2x128xf32>
    %73 = arith.mulf %72, %22 : vector<2x128xf32>
    %74 = math.tanh %73 : vector<2x128xf32>
    %75 = arith.mulf %74, %25 : vector<2x128xf32>
    %76 = arith.addf %75, %28 : vector<2x128xf32>
    %77 = vector.extract_strided_slice %76 {offsets = [0, 0], sizes = [2, 32], strides = [1, 1]} : vector<2x128xf32> to vector<2x32xf32>
    %78 = vector.extract_strided_slice %76 {offsets = [0, 32], sizes = [2, 32], strides = [1, 1]} : vector<2x128xf32> to vector<2x32xf32>
    %79 = vector.extract_strided_slice %76 {offsets = [0, 64], sizes = [2, 32], strides = [1, 1]} : vector<2x128xf32> to vector<2x32xf32>
    %80 = vector.extract_strided_slice %76 {offsets = [0, 96], sizes = [2, 32], strides = [1, 1]} : vector<2x128xf32> to vector<2x32xf32>
    %81 = arith.mulf %78, %65 : vector<2x32xf32>
    %82 = arith.mulf %77, %79 : vector<2x32xf32>
    %83 = arith.addf %81, %82 : vector<2x32xf32>
    %84 = math.tanh %83 : vector<2x32xf32>
    %85 = arith.mulf %80, %84 : vector<2x32xf32>
    %c4_28 = arith.constant 4 : index
    %c0_29 = arith.constant 0 : index
    %86 = vector.load %arg16[%c4_28, %c0_29] : memref<16x32xf32, #tpu.memory_space<vmem>>, vector<2x32xf32>
    tpu.vector_store %arg16[%c4_28, %c0_29], %85 {strides = array<i32>} : memref<16x32xf32, #tpu.memory_space<vmem>>, vector<2x32xf32>,
    %c6 = arith.constant 6 : index
    %c0_30 = arith.constant 0 : index
    %87 = vector.load %arg15[%c6, %c0_30] : memref<16x128xf32, #tpu.memory_space<vmem>>, vector<2x128xf32>
    %88 = arith.truncf %85 : vector<2x32xf32> to vector<2x32xbf16>
    %cst_31 = arith.constant dense<0.000000e+00> : vector<2x128xf32>
    %89 = tpu.matmul %88, %30, %cst_31 {dimension_numbers = #tpu.dot_dimension_numbers<[1], [0], [0], [1], [0, 0, 1, 1], [], []>} : vector<2x32xbf16>, vector<32x128xbf16>, vector<2x128xf32> -> vector<2x128xf32>
    %90 = arith.addf %87, %89 : vector<2x128xf32>
    %91 = arith.mulf %90, %22 : vector<2x128xf32>
    %92 = math.tanh %91 : vector<2x128xf32>
    %93 = arith.mulf %92, %25 : vector<2x128xf32>
    %94 = arith.addf %93, %28 : vector<2x128xf32>
    %95 = vector.extract_strided_slice %94 {offsets = [0, 0], sizes = [2, 32], strides = [1, 1]} : vector<2x128xf32> to vector<2x32xf32>
    %96 = vector.extract_strided_slice %94 {offsets = [0, 32], sizes = [2, 32], strides = [1, 1]} : vector<2x128xf32> to vector<2x32xf32>
    %97 = vector.extract_strided_slice %94 {offsets = [0, 64], sizes = [2, 32], strides = [1, 1]} : vector<2x128xf32> to vector<2x32xf32>
    %98 = vector.extract_strided_slice %94 {offsets = [0, 96], sizes = [2, 32], strides = [1, 1]} : vector<2x128xf32> to vector<2x32xf32>
    %99 = arith.mulf %96, %83 : vector<2x32xf32>
    %100 = arith.mulf %95, %97 : vector<2x32xf32>
    %101 = arith.addf %99, %100 : vector<2x32xf32>
    %102 = math.tanh %101 : vector<2x32xf32>
    %103 = arith.mulf %98, %102 : vector<2x32xf32>
    %c6_32 = arith.constant 6 : index
    %c0_33 = arith.constant 0 : index
    %104 = vector.load %arg16[%c6_32, %c0_33] : memref<16x32xf32, #tpu.memory_space<vmem>>, vector<2x32xf32>
    tpu.vector_store %arg16[%c6_32, %c0_33], %103 {strides = array<i32>} : memref<16x32xf32, #tpu.memory_space<vmem>>, vector<2x32xf32>,
    %c8 = arith.constant 8 : index
    %c0_34 = arith.constant 0 : index
    %105 = vector.load %arg15[%c8, %c0_34] : memref<16x128xf32, #tpu.memory_space<vmem>>, vector<2x128xf32>
    %106 = arith.truncf %103 : vector<2x32xf32> to vector<2x32xbf16>
    %cst_35 = arith.constant dense<0.000000e+00> : vector<2x128xf32>
    %107 = tpu.matmul %106, %30, %cst_35 {dimension_numbers = #tpu.dot_dimension_numbers<[1], [0], [0], [1], [0, 0, 1, 1], [], []>} : vector<2x32xbf16>, vector<32x128xbf16>, vector<2x128xf32> -> vector<2x128xf32>
    %108 = arith.addf %105, %107 : vector<2x128xf32>
    %109 = arith.mulf %108, %22 : vector<2x128xf32>
    %110 = math.tanh %109 : vector<2x128xf32>
    %111 = arith.mulf %110, %25 : vector<2x128xf32>
    %112 = arith.addf %111, %28 : vector<2x128xf32>
    %113 = vector.extract_strided_slice %112 {offsets = [0, 0], sizes = [2, 32], strides = [1, 1]} : vector<2x128xf32> to vector<2x32xf32>
    %114 = vector.extract_strided_slice %112 {offsets = [0, 32], sizes = [2, 32], strides = [1, 1]} : vector<2x128xf32> to vector<2x32xf32>
    %115 = vector.extract_strided_slice %112 {offsets = [0, 64], sizes = [2, 32], strides = [1, 1]} : vector<2x128xf32> to vector<2x32xf32>
    %116 = vector.extract_strided_slice %112 {offsets = [0, 96], sizes = [2, 32], strides = [1, 1]} : vector<2x128xf32> to vector<2x32xf32>
    %117 = arith.mulf %114, %101 : vector<2x32xf32>
    %118 = arith.mulf %113, %115 : vector<2x32xf32>
    %119 = arith.addf %117, %118 : vector<2x32xf32>
    %120 = math.tanh %119 : vector<2x32xf32>
    %121 = arith.mulf %116, %120 : vector<2x32xf32>
    %c8_36 = arith.constant 8 : index
    %c0_37 = arith.constant 0 : index
    %122 = vector.load %arg16[%c8_36, %c0_37] : memref<16x32xf32, #tpu.memory_space<vmem>>, vector<2x32xf32>
    tpu.vector_store %arg16[%c8_36, %c0_37], %121 {strides = array<i32>} : memref<16x32xf32, #tpu.memory_space<vmem>>, vector<2x32xf32>,
    %c10 = arith.constant 10 : index
    %c0_38 = arith.constant 0 : index
    %123 = vector.load %arg15[%c10, %c0_38] : memref<16x128xf32, #tpu.memory_space<vmem>>, vector<2x128xf32>
    %124 = arith.truncf %121 : vector<2x32xf32> to vector<2x32xbf16>
    %cst_39 = arith.constant dense<0.000000e+00> : vector<2x128xf32>
    %125 = tpu.matmul %124, %30, %cst_39 {dimension_numbers = #tpu.dot_dimension_numbers<[1], [0], [0], [1], [0, 0, 1, 1], [], []>} : vector<2x32xbf16>, vector<32x128xbf16>, vector<2x128xf32> -> vector<2x128xf32>
    %126 = arith.addf %123, %125 : vector<2x128xf32>
    %127 = arith.mulf %126, %22 : vector<2x128xf32>
    %128 = math.tanh %127 : vector<2x128xf32>
    %129 = arith.mulf %128, %25 : vector<2x128xf32>
    %130 = arith.addf %129, %28 : vector<2x128xf32>
    %131 = vector.extract_strided_slice %130 {offsets = [0, 0], sizes = [2, 32], strides = [1, 1]} : vector<2x128xf32> to vector<2x32xf32>
    %132 = vector.extract_strided_slice %130 {offsets = [0, 32], sizes = [2, 32], strides = [1, 1]} : vector<2x128xf32> to vector<2x32xf32>
    %133 = vector.extract_strided_slice %130 {offsets = [0, 64], sizes = [2, 32], strides = [1, 1]} : vector<2x128xf32> to vector<2x32xf32>
    %134 = vector.extract_strided_slice %130 {offsets = [0, 96], sizes = [2, 32], strides = [1, 1]} : vector<2x128xf32> to vector<2x32xf32>
    %135 = arith.mulf %132, %119 : vector<2x32xf32>
    %136 = arith.mulf %131, %133 : vector<2x32xf32>
    %137 = arith.addf %135, %136 : vector<2x32xf32>
    %138 = math.tanh %137 : vector<2x32xf32>
    %139 = arith.mulf %134, %138 : vector<2x32xf32>
    %c10_40 = arith.constant 10 : index
    %c0_41 = arith.constant 0 : index
    %140 = vector.load %arg16[%c10_40, %c0_41] : memref<16x32xf32, #tpu.memory_space<vmem>>, vector<2x32xf32>
    tpu.vector_store %arg16[%c10_40, %c0_41], %139 {strides = array<i32>} : memref<16x32xf32, #tpu.memory_space<vmem>>, vector<2x32xf32>,
    %c12 = arith.constant 12 : index
    %c0_42 = arith.constant 0 : index
    %141 = vector.load %arg15[%c12, %c0_42] : memref<16x128xf32, #tpu.memory_space<vmem>>, vector<2x128xf32>
    %142 = arith.truncf %139 : vector<2x32xf32> to vector<2x32xbf16>
    %cst_43 = arith.constant dense<0.000000e+00> : vector<2x128xf32>
    %143 = tpu.matmul %142, %30, %cst_43 {dimension_numbers = #tpu.dot_dimension_numbers<[1], [0], [0], [1], [0, 0, 1, 1], [], []>} : vector<2x32xbf16>, vector<32x128xbf16>, vector<2x128xf32> -> vector<2x128xf32>
    %144 = arith.addf %141, %143 : vector<2x128xf32>
    %145 = arith.mulf %144, %22 : vector<2x128xf32>
    %146 = math.tanh %145 : vector<2x128xf32>
    %147 = arith.mulf %146, %25 : vector<2x128xf32>
    %148 = arith.addf %147, %28 : vector<2x128xf32>
    %149 = vector.extract_strided_slice %148 {offsets = [0, 0], sizes = [2, 32], strides = [1, 1]} : vector<2x128xf32> to vector<2x32xf32>
    %150 = vector.extract_strided_slice %148 {offsets = [0, 32], sizes = [2, 32], strides = [1, 1]} : vector<2x128xf32> to vector<2x32xf32>
    %151 = vector.extract_strided_slice %148 {offsets = [0, 64], sizes = [2, 32], strides = [1, 1]} : vector<2x128xf32> to vector<2x32xf32>
    %152 = vector.extract_strided_slice %148 {offsets = [0, 96], sizes = [2, 32], strides = [1, 1]} : vector<2x128xf32> to vector<2x32xf32>
    %153 = arith.mulf %150, %137 : vector<2x32xf32>
    %154 = arith.mulf %149, %151 : vector<2x32xf32>
    %155 = arith.addf %153, %154 : vector<2x32xf32>
    %156 = math.tanh %155 : vector<2x32xf32>
    %157 = arith.mulf %152, %156 : vector<2x32xf32>
    %c12_44 = arith.constant 12 : index
    %c0_45 = arith.constant 0 : index
    %158 = vector.load %arg16[%c12_44, %c0_45] : memref<16x32xf32, #tpu.memory_space<vmem>>, vector<2x32xf32>
    tpu.vector_store %arg16[%c12_44, %c0_45], %157 {strides = array<i32>} : memref<16x32xf32, #tpu.memory_space<vmem>>, vector<2x32xf32>,
    %c14 = arith.constant 14 : index
    %c0_46 = arith.constant 0 : index
    %159 = vector.load %arg15[%c14, %c0_46] : memref<16x128xf32, #tpu.memory_space<vmem>>, vector<2x128xf32>
    %160 = arith.truncf %157 : vector<2x32xf32> to vector<2x32xbf16>
    %cst_47 = arith.constant dense<0.000000e+00> : vector<2x128xf32>
    %161 = tpu.matmul %160, %30, %cst_47 {dimension_numbers = #tpu.dot_dimension_numbers<[1], [0], [0], [1], [0, 0, 1, 1], [], []>} : vector<2x32xbf16>, vector<32x128xbf16>, vector<2x128xf32> -> vector<2x128xf32>
    %162 = arith.addf %159, %161 : vector<2x128xf32>
    %163 = arith.mulf %162, %22 : vector<2x128xf32>
    %164 = math.tanh %163 : vector<2x128xf32>
    %165 = arith.mulf %164, %25 : vector<2x128xf32>
    %166 = arith.addf %165, %28 : vector<2x128xf32>
    %167 = vector.extract_strided_slice %166 {offsets = [0, 0], sizes = [2, 32], strides = [1, 1]} : vector<2x128xf32> to vector<2x32xf32>
    %168 = vector.extract_strided_slice %166 {offsets = [0, 32], sizes = [2, 32], strides = [1, 1]} : vector<2x128xf32> to vector<2x32xf32>
    %169 = vector.extract_strided_slice %166 {offsets = [0, 64], sizes = [2, 32], strides = [1, 1]} : vector<2x128xf32> to vector<2x32xf32>
    %170 = vector.extract_strided_slice %166 {offsets = [0, 96], sizes = [2, 32], strides = [1, 1]} : vector<2x128xf32> to vector<2x32xf32>
    %171 = arith.mulf %168, %155 : vector<2x32xf32>
    %172 = arith.mulf %167, %169 : vector<2x32xf32>
    %173 = arith.addf %171, %172 : vector<2x32xf32>
    %174 = math.tanh %173 : vector<2x32xf32>
    %175 = arith.mulf %170, %174 : vector<2x32xf32>
    %c14_48 = arith.constant 14 : index
    %c0_49 = arith.constant 0 : index
    %176 = vector.load %arg16[%c14_48, %c0_49] : memref<16x32xf32, #tpu.memory_space<vmem>>, vector<2x32xf32>
    tpu.vector_store %arg16[%c14_48, %c0_49], %175 {strides = array<i32>} : memref<16x32xf32, #tpu.memory_space<vmem>>, vector<2x32xf32>,
    %c0_50 = arith.constant 0 : index
    %c0_51 = arith.constant 0 : index
    %177 = vector.load %arg16[%c0_50, %c0_51] : memref<16x32xf32, #tpu.memory_space<vmem>>, vector<16x32xf32>
    %c0_52 = arith.constant 0 : index
    %c0_53 = arith.constant 0 : index
    %178 = vector.load %arg4[%c0_52, %c0_53] : memref<1x32xf32, #tpu.memory_space<vmem>>, vector<1x32xf32>
    %c0_54 = arith.constant 0 : index
    %c0_55 = arith.constant 0 : index
    %179 = vector.load %arg5[%c0_54, %c0_55] : memref<1x32xf32, #tpu.memory_space<vmem>>, vector<1x32xf32>
    %cst_56 = arith.constant dense<0.000000e+00> : vector<16xf32>
    %180 = vector.multi_reduction <add>, %177, %cst_56 [1] : vector<16x32xf32> to vector<16xf32>
    %181 = vector.shape_cast %180 : vector<16xf32> to vector<16x1xf32>
    %cst_57 = arith.constant 3.200000e+01 : f32
    %182 = vector.broadcast %cst_57 : f32 to vector<16x1xf32>
    %183 = arith.divf %181, %182 : vector<16x1xf32>
    %184 = vector.broadcast %183 : vector<16x1xf32> to vector<16x32xf32>
    %185 = arith.subf %177, %184 : vector<16x32xf32>
    %186 = arith.mulf %185, %185 : vector<16x32xf32>
    %cst_58 = arith.constant dense<0.000000e+00> : vector<16xf32>
    %187 = vector.multi_reduction <add>, %186, %cst_58 [1] : vector<16x32xf32> to vector<16xf32>
    %188 = vector.shape_cast %187 : vector<16xf32> to vector<16x1xf32>
    %cst_59 = arith.constant 3.200000e+01 : f32
    %189 = vector.broadcast %cst_59 : f32 to vector<16x1xf32>
    %190 = arith.divf %188, %189 : vector<16x1xf32>
    %191 = vector.broadcast %183 : vector<16x1xf32> to vector<16x32xf32>
    %192 = arith.subf %177, %191 : vector<16x32xf32>
    %cst_60 = arith.constant 9.99999974E-6 : f32
    %193 = vector.broadcast %cst_60 : f32 to vector<16x1xf32>
    %194 = arith.addf %190, %193 : vector<16x1xf32>
    %195 = math.rsqrt %194 : vector<16x1xf32>
    %196 = vector.broadcast %195 : vector<16x1xf32> to vector<16x32xf32>
    %197 = arith.mulf %192, %196 : vector<16x32xf32>
    %198 = vector.broadcast %178 : vector<1x32xf32> to vector<16x32xf32>
    %199 = arith.mulf %197, %198 : vector<16x32xf32>
    %200 = vector.broadcast %179 : vector<1x32xf32> to vector<16x32xf32>
    %201 = arith.addf %199, %200 : vector<16x32xf32>
    %c0_61 = arith.constant 0 : index
    %c0_62 = arith.constant 0 : index
    %202 = vector.load %arg8[%c0_61, %c0_62] : memref<32x64xf32, #tpu.memory_space<vmem>>, vector<32x64xf32>
    %203 = arith.truncf %201 : vector<16x32xf32> to vector<16x32xbf16>
    %204 = arith.truncf %202 : vector<32x64xf32> to vector<32x64xbf16>
    %cst_63 = arith.constant dense<0.000000e+00> : vector<16x64xf32>
    %205 = tpu.matmul %203, %204, %cst_63 {dimension_numbers = #tpu.dot_dimension_numbers<[1], [0], [0], [1], [0, 0, 1, 1], [], []>} : vector<16x32xbf16>, vector<32x64xbf16>, vector<16x64xf32> -> vector<16x64xf32>
    %c0_64 = arith.constant 0 : index
    %c0_65 = arith.constant 0 : index
    %206 = vector.load %arg9[%c0_64, %c0_65] : memref<1x64xf32, #tpu.memory_space<vmem>>, vector<1x64xf32>
    %207 = vector.broadcast %206 : vector<1x64xf32> to vector<16x64xf32>
    %208 = arith.addf %205, %207 : vector<16x64xf32>
    %cst_66 = arith.constant 0.000000e+00 : f32
    %209 = vector.broadcast %cst_66 : f32 to vector<16x64xf32>
    %210 = arith.maximumf %208, %209 : vector<16x64xf32>
    %c0_67 = arith.constant 0 : index
    %c0_68 = arith.constant 0 : index
    %211 = vector.load %arg6[%c0_67, %c0_68] : memref<1x64xf32, #tpu.memory_space<vmem>>, vector<1x64xf32>
    %c0_69 = arith.constant 0 : index
    %c0_70 = arith.constant 0 : index
    %212 = vector.load %arg7[%c0_69, %c0_70] : memref<1x64xf32, #tpu.memory_space<vmem>>, vector<1x64xf32>
    %cst_71 = arith.constant dense<0.000000e+00> : vector<16xf32>
    %213 = vector.multi_reduction <add>, %210, %cst_71 [1] : vector<16x64xf32> to vector<16xf32>
    %214 = vector.shape_cast %213 : vector<16xf32> to vector<16x1xf32>
    %cst_72 = arith.constant 6.400000e+01 : f32
    %215 = vector.broadcast %cst_72 : f32 to vector<16x1xf32>
    %216 = arith.divf %214, %215 : vector<16x1xf32>
    %217 = vector.broadcast %216 : vector<16x1xf32> to vector<16x64xf32>
    %218 = arith.subf %210, %217 : vector<16x64xf32>
    %219 = arith.mulf %218, %218 : vector<16x64xf32>
    %cst_73 = arith.constant dense<0.000000e+00> : vector<16xf32>
    %220 = vector.multi_reduction <add>, %219, %cst_73 [1] : vector<16x64xf32> to vector<16xf32>
    %221 = vector.shape_cast %220 : vector<16xf32> to vector<16x1xf32>
    %cst_74 = arith.constant 6.400000e+01 : f32
    %222 = vector.broadcast %cst_74 : f32 to vector<16x1xf32>
    %223 = arith.divf %221, %222 : vector<16x1xf32>
    %224 = vector.broadcast %216 : vector<16x1xf32> to vector<16x64xf32>
    %225 = arith.subf %210, %224 : vector<16x64xf32>
    %cst_75 = arith.constant 9.99999974E-6 : f32
    %226 = vector.broadcast %cst_75 : f32 to vector<16x1xf32>
    %227 = arith.addf %223, %226 : vector<16x1xf32>
    %228 = math.rsqrt %227 : vector<16x1xf32>
    %229 = vector.broadcast %228 : vector<16x1xf32> to vector<16x64xf32>
    %230 = arith.mulf %225, %229 : vector<16x64xf32>
    %231 = vector.broadcast %211 : vector<1x64xf32> to vector<16x64xf32>
    %232 = arith.mulf %230, %231 : vector<16x64xf32>
    %233 = vector.broadcast %212 : vector<1x64xf32> to vector<16x64xf32>
    %234 = arith.addf %232, %233 : vector<16x64xf32>
    %c0_76 = arith.constant 0 : index
    %c0_77 = arith.constant 0 : index
    %235 = vector.load %arg10[%c0_76, %c0_77] : memref<64x32xf32, #tpu.memory_space<vmem>>, vector<64x32xf32>
    %236 = arith.truncf %234 : vector<16x64xf32> to vector<16x64xbf16>
    %237 = arith.truncf %235 : vector<64x32xf32> to vector<64x32xbf16>
    %cst_78 = arith.constant dense<0.000000e+00> : vector<16x32xf32>
    %238 = tpu.matmul %236, %237, %cst_78 {dimension_numbers = #tpu.dot_dimension_numbers<[1], [0], [0], [1], [0, 0, 1, 1], [], []>} : vector<16x64xbf16>, vector<64x32xbf16>, vector<16x32xf32> -> vector<16x32xf32>
    %c0_79 = arith.constant 0 : index
    %c0_80 = arith.constant 0 : index
    %239 = vector.load %arg11[%c0_79, %c0_80] : memref<1x32xf32, #tpu.memory_space<vmem>>, vector<1x32xf32>
    %240 = vector.broadcast %239 : vector<1x32xf32> to vector<16x32xf32>
    %241 = arith.addf %238, %240 : vector<16x32xf32>
    %cst_81 = arith.constant 0.000000e+00 : f32
    %242 = vector.broadcast %cst_81 : f32 to vector<16x32xf32>
    %243 = arith.maximumf %241, %242 : vector<16x32xf32>
    %c0_82 = arith.constant 0 : index
    %c0_83 = arith.constant 0 : index
    %244 = vector.load %arg4[%c0_82, %c0_83] : memref<1x32xf32, #tpu.memory_space<vmem>>, vector<1x32xf32>
    %c0_84 = arith.constant 0 : index
    %c0_85 = arith.constant 0 : index
    %245 = vector.load %arg5[%c0_84, %c0_85] : memref<1x32xf32, #tpu.memory_space<vmem>>, vector<1x32xf32>
    %cst_86 = arith.constant dense<0.000000e+00> : vector<16xf32>
    %246 = vector.multi_reduction <add>, %243, %cst_86 [1] : vector<16x32xf32> to vector<16xf32>
    %247 = vector.shape_cast %246 : vector<16xf32> to vector<16x1xf32>
    %cst_87 = arith.constant 3.200000e+01 : f32
    %248 = vector.broadcast %cst_87 : f32 to vector<16x1xf32>
    %249 = arith.divf %247, %248 : vector<16x1xf32>
    %250 = vector.broadcast %249 : vector<16x1xf32> to vector<16x32xf32>
    %251 = arith.subf %243, %250 : vector<16x32xf32>
    %252 = arith.mulf %251, %251 : vector<16x32xf32>
    %cst_88 = arith.constant dense<0.000000e+00> : vector<16xf32>
    %253 = vector.multi_reduction <add>, %252, %cst_88 [1] : vector<16x32xf32> to vector<16xf32>
    %254 = vector.shape_cast %253 : vector<16xf32> to vector<16x1xf32>
    %cst_89 = arith.constant 3.200000e+01 : f32
    %255 = vector.broadcast %cst_89 : f32 to vector<16x1xf32>
    %256 = arith.divf %254, %255 : vector<16x1xf32>
    %257 = vector.broadcast %249 : vector<16x1xf32> to vector<16x32xf32>
    %258 = arith.subf %243, %257 : vector<16x32xf32>
    %cst_90 = arith.constant 9.99999974E-6 : f32
    %259 = vector.broadcast %cst_90 : f32 to vector<16x1xf32>
    %260 = arith.addf %256, %259 : vector<16x1xf32>
    %261 = math.rsqrt %260 : vector<16x1xf32>
    %262 = vector.broadcast %261 : vector<16x1xf32> to vector<16x32xf32>
    %263 = arith.mulf %258, %262 : vector<16x32xf32>
    %264 = vector.broadcast %244 : vector<1x32xf32> to vector<16x32xf32>
    %265 = arith.mulf %263, %264 : vector<16x32xf32>
    %266 = vector.broadcast %245 : vector<1x32xf32> to vector<16x32xf32>
    %267 = arith.addf %265, %266 : vector<16x32xf32>
    %268 = vector.extract_strided_slice %267 {offsets = [0, 0], sizes = [2, 32], strides = [1, 1]} : vector<16x32xf32> to vector<2x32xf32>
    %269 = vector.extract_strided_slice %267 {offsets = [2, 0], sizes = [2, 32], strides = [1, 1]} : vector<16x32xf32> to vector<2x32xf32>
    %270 = arith.addf %268, %269 : vector<2x32xf32>
    %271 = vector.extract_strided_slice %267 {offsets = [4, 0], sizes = [2, 32], strides = [1, 1]} : vector<16x32xf32> to vector<2x32xf32>
    %272 = arith.addf %270, %271 : vector<2x32xf32>
    %273 = vector.extract_strided_slice %267 {offsets = [6, 0], sizes = [2, 32], strides = [1, 1]} : vector<16x32xf32> to vector<2x32xf32>
    %274 = arith.addf %272, %273 : vector<2x32xf32>
    %275 = vector.extract_strided_slice %267 {offsets = [8, 0], sizes = [2, 32], strides = [1, 1]} : vector<16x32xf32> to vector<2x32xf32>
    %276 = arith.addf %274, %275 : vector<2x32xf32>
    %277 = vector.extract_strided_slice %267 {offsets = [10, 0], sizes = [2, 32], strides = [1, 1]} : vector<16x32xf32> to vector<2x32xf32>
    %278 = arith.addf %276, %277 : vector<2x32xf32>
    %279 = vector.extract_strided_slice %267 {offsets = [12, 0], sizes = [2, 32], strides = [1, 1]} : vector<16x32xf32> to vector<2x32xf32>
    %280 = arith.addf %278, %279 : vector<2x32xf32>
    %281 = vector.extract_strided_slice %267 {offsets = [14, 0], sizes = [2, 32], strides = [1, 1]} : vector<16x32xf32> to vector<2x32xf32>
    %282 = arith.addf %280, %281 : vector<2x32xf32>
    %c0_91 = arith.constant 0 : index
    %c0_92 = arith.constant 0 : index
    %283 = vector.load %arg12[%c0_91, %c0_92] : memref<32x3xf32, #tpu.memory_space<vmem>>, vector<32x3xf32>
    %284 = arith.truncf %282 : vector<2x32xf32> to vector<2x32xbf16>
    %285 = arith.truncf %283 : vector<32x3xf32> to vector<32x3xbf16>
    %cst_93 = arith.constant dense<0.000000e+00> : vector<2x3xf32>
    %286 = tpu.matmul %284, %285, %cst_93 {dimension_numbers = #tpu.dot_dimension_numbers<[1], [0], [0], [1], [0, 0, 1, 1], [], []>} : vector<2x32xbf16>, vector<32x3xbf16>, vector<2x3xf32> -> vector<2x3xf32>
    %c0_94 = arith.constant 0 : index
    %c0_95 = arith.constant 0 : index
    %287 = vector.load %arg13[%c0_94, %c0_95] : memref<1x3xf32, #tpu.memory_space<vmem>>, vector<1x3xf32>
    %cst_96 = arith.constant 8.000000e+00 : f32
    %288 = vector.broadcast %cst_96 : f32 to vector<1x3xf32>
    %289 = arith.mulf %288, %287 : vector<1x3xf32>
    %290 = vector.broadcast %289 : vector<1x3xf32> to vector<2x3xf32>
    %291 = arith.addf %286, %290 : vector<2x3xf32>
    %c0_97 = arith.constant 0 : index
    %c0_98 = arith.constant 0 : index
    %292 = vector.load %arg14[%c0_97, %c0_98] : memref<2x3xf32, #tpu.memory_space<vmem>>, vector<2x3xf32>
    tpu.vector_store %arg14[%c0_97, %c0_98], %291 {strides = array<i32>} : memref<2x3xf32, #tpu.memory_space<vmem>>, vector<2x3xf32>,
    return
  }
}

</mosaic_0001>

<bundles_post_ra>
// kernel: tpu_custom_call.1
= control target key start
LH: loop header
LB: loop body
LE: loop exit
PB: predicated region body
PF: predicated region fallthrough
CT: control target
= control target key end

     0   :  { %19 = vsyncpa [#allocation5], 0  ;;  %s1981_s0 = inlined_call_operand.vmem [shape: s32[16,1], index: 0, kind: input, shape index: {}]   ;;  %s1982_s1 = inlined_call_operand.vmem [shape: f32[128,128], index: 1, kind: input, shape index: {}]   ;;  %s1983_s2 = inlined_call_operand.hbm [shape: f32[1,128], index: 2, kind: input, shape index: {}]   ;;  %s1984_s3 = inlined_call_operand.hbm [shape: f32[32,128], index: 3, kind: input, shape index: {}]   ;;  %s1985_s4 = inlined_call_operand.hbm [shape: f32[1,32], index: 4, kind: input, shape index: {}]   ;;  %s1986_s5 = inlined_call_operand.vmem [shape: f32[1,32], index: 5, kind: input, shape index: {}]   ;;  %s1987_s6 = inlined_call_operand.vmem [shape: f32[1,64], index: 6, kind: input, shape index: {}]   ;;  %s1988_s7 = inlined_call_operand.vmem [shape: f32[1,64], index: 7, kind: input, shape index: {}]   ;;  %s1989_s8 = inlined_call_operand.hbm [shape: f32[32,64], index: 8, kind: input, shape index: {}]   ;;  %s1990_s9 = inlined_call_operand.vmem [shape: f32[1,64], index: 9, kind: input, shape index: {}]   ;;  %s1991_s10 = inlined_call_operand.vmem [shape: f32[64,32], index: 10, kind: input, shape index: {}]   ;;  %s1992_s11 = inlined_call_operand.vmem [shape: f32[1,32], index: 11, kind: input, shape index: {}]   ;;  %s1993_s12 = inlined_call_operand.vmem [shape: f32[32,3], index: 12, kind: input, shape index: {}]   ;;  %s1994_s13 = inlined_call_operand.vmem [shape: f32[1,3], index: 13, kind: input, shape index: {}]   ;;  %s1995_s14 = inlined_call_operand.hbm [shape: f32[2,3], index: 14, kind: output, shape index: {}]  }
   0x1   :  { %20 = vsyncpa [#allocation8], 0 }
   0x2   :  { %21 = vsyncpa [#allocation11], 0 }
   0x3   :  { %22 = vsyncpa [#allocation6], 0  ;;  %s1501_s29 = smov [#allocation7]   ;;  %s1383_s17 = scalar_lea.hbm %s1984_s3, 512 }
   0x4   :  { %s42_s30 = sshll.u32 %s1501_s29, 4  ;;  %p1384_p0 = scmp.ne.s32.totalorder %s1984_s3, %s1383_s17  ;;  %s43_s30 = int_to_ptr.vmem [resolvable:$true] %s42_s30 }
   0x5   :  { %p1387_p1 = scmp.lt.u32.totalorder %s1383_s17, %s1984_s3 }
   0x7   :  { %p1389_p2 = pnand %p1387_p1, %p1384_p0 }
   0x9   :  { %1392 = shalt.err (!%p1389_p2)
}
   0xa   :  { %s1393_s22 = scalar_lea.vmem %s43_s30, 512  ;;  %p1398_p4 = scmp.lt.s32.totalorder %s43_s30, %s43_s30 }
   0xb   :  { %p1394_p3 = scmp.ne.s32.totalorder %s43_s30, %s1393_s22  ;;  %p1399_p5 = scmp.lt.s32.totalorder %s1393_s22, %s1393_s22 }
   0xd   :  { %p1400_p6 = por %p1399_p5, %p1398_p4 }
   0xf   :  { %p1401_p7 = pnand %p1400_p6, %p1394_p3 }
  0x11   :  { %1404 = shalt.err (!%p1401_p7)
}
  0x12   :  { %s1502_s23 = smov 128   ;;  %s1503_s24 = smov 8  }
  0x13   :  { %48 = dma.hbm_to_vmem [thread:$0]  %s1984_s3, 512, %s43_s30, [#allocation8], %s1502_s23, %s1502_s23, %s1503_s24  }
  0x14   :  { %s1504_s27 = smov [#allocation4]   ;;  %s1505_s29 = smov [#allocation9]  }
  0x15   :  { %s33_s28 = sshll.u32 %s1504_s27, 4  ;;  %s55_s15 = sshll.u32 %s1505_s29, 4  ;;  %s34_s28 = int_to_ptr.vmem [resolvable:$true] %s33_s28  ;;  %s56_s15 = int_to_ptr.vmem [resolvable:$true] %s55_s15 }
  0x16   :  { %s1405_s18 = scalar_lea.hbm %s1983_s2, 16 }
  0x17   :  { %p1406_p8 = scmp.ne.s32.totalorder %s1983_s2, %s1405_s18  ;;  %p1409_p9 = scmp.lt.u32.totalorder %s1405_s18, %s1983_s2 }
  0x19   :  { %p1411_p10 = pnand %p1409_p9, %p1406_p8 }
  0x1b   :  { %1414 = shalt.err (!%p1411_p10)
}
  0x1c   :  { %s1415_s3 = scalar_lea.vmem %s34_s28, 16  ;;  %s1419_s30 = scalar_lea.vmem %s34_s28, 32 }
  0x1d   :  { %p1416_p11 = scmp.ne.s32.totalorder %s34_s28, %s1415_s3  ;;  %p1420_p12 = scmp.lt.s32.totalorder %s34_s28, %s34_s28 }
  0x1e   :  { %p1421_p13 = scmp.lt.s32.totalorder %s1419_s30, %s1415_s3 }
  0x20   :  { %p1422_p0 = por %p1421_p13, %p1420_p12 }
  0x22   :  { %p1423_p1 = pnand %p1422_p0, %p1416_p11 }
  0x24   :  { %1426 = shalt.err (!%p1423_p1)
}
  0x25   :  { %36 = dma.hbm_to_vmem [thread:$0]  %s1983_s2, 16, %s34_s28, [#allocation5]  }
  0x26   :  { %s1427_s16 = scalar_lea.hbm %s1985_s4, 16 }
  0x27   :  { %p1428_p2 = scmp.ne.s32.totalorder %s1985_s4, %s1427_s16  ;;  %p1431_p3 = scmp.lt.u32.totalorder %s1427_s16, %s1985_s4 }
  0x29   :  { %p1433_p4 = pnand %p1431_p3, %p1428_p2 }
  0x2b   :  { %1436 = shalt.err (!%p1433_p4)
}
  0x2c   :  { %s1437_s21 = scalar_lea.vmem %s56_s15, 16  ;;  %s1441_s22 = scalar_lea.vmem %s56_s15, 32 }
  0x2d   :  { %p1438_p5 = scmp.ne.s32.totalorder %s56_s15, %s1437_s21  ;;  %p1442_p6 = scmp.lt.s32.totalorder %s56_s15, %s56_s15 }
  0x2e   :  { %p1443_p7 = scmp.lt.s32.totalorder %s1441_s22, %s1437_s21 }
  0x30   :  { %p1444_p8 = por %p1443_p7, %p1442_p6 }
  0x32   :  { %p1445_p9 = pnand %p1444_p8, %p1438_p5 }
  0x34   :  { %1448 = shalt.err (!%p1445_p9)
}
  0x35   :  { %58 = dma.hbm_to_vmem [thread:$0]  %s1985_s4, 16, %s56_s15, [#allocation8]  }
  0x36   :  { %s1506_s3 = smov [#allocation10]   ;;  %s1449_s27 = scalar_lea.hbm %s1989_s8, 512 }
  0x37   :  { %s70_s30 = sshll.u32 %s1506_s3, 4  ;;  %p1450_p10 = scmp.ne.s32.totalorder %s1989_s8, %s1449_s27  ;;  %s71_s30 = int_to_ptr.vmem [resolvable:$true] %s70_s30 }
  0x38   :  { %p1453_p11 = scmp.lt.u32.totalorder %s1449_s27, %s1989_s8 }
  0x3a   :  { %p1455_p12 = pnand %p1453_p11, %p1450_p10 }
  0x3c   :  { %1458 = shalt.err (!%p1455_p12)
}
  0x3d   :  { %s1459_s19 = scalar_lea.vmem %s71_s30, 512  ;;  %p1464_p0 = scmp.lt.s32.totalorder %s71_s30, %s71_s30 }
  0x3e   :  { %p1460_p13 = scmp.ne.s32.totalorder %s71_s30, %s1459_s19  ;;  %p1465_p1 = scmp.lt.s32.totalorder %s1459_s19, %s1459_s19 }
  0x40   :  { %p1466_p2 = por %p1465_p1, %p1464_p0 }
  0x42   :  { %p1467_p3 = pnand %p1466_p2, %p1460_p13 }
  0x44   :  { %1470 = shalt.err (!%p1467_p3)
}
  0x45   :  { %76 = dma.hbm_to_vmem [thread:$0]  %s1989_s8, 512, %s71_s30, [#allocation11], %s1502_s23, %s1502_s23, %s1503_s24  }
  0x46   :  { %1493 = dma.done.wait [#allocation5], 16  }
  0x47   :  { %1494 = vsyncadd [#allocation5], 4294967280 }
  0x48   :  { %1495 = dma.done.wait [#allocation8], 528  }
  0x49   :  { %1496 = vsyncadd [#allocation8], 4294966768 }
  0x4a   :  { %1497 = dma.done.wait [#allocation11], 512  }
  0x4b   :  { %1498 = vsyncadd [#allocation11], 4294966784  ;;  %v1507_v0 = vmov 0   ;;  %v1508_v1 = vmov 0.0   ;;  %v100_v2 = vld [vmem:[%s1981_s0] sm:$0xff]  ;;  %v118_v4 = vld [vmem:[%s1982_s1 + $0x8] sm:$0xff]  ;;  %v102_v34 = vlaneseq }
  0x4c   :  { %1338 = vset.pattern.permute.xlu0 %v1507_v0  ;;  %1212 = vmatprep.subr.bf16.mxu0 %v1508_v1  ;;  %v117_v3 = vld [vmem:[%s1982_s1] sm:$0xff]  ;;  %v119_v5 = vld [vmem:[%s1982_s1 + $0x10] sm:$0xff]  ;;  %v120_v6 = vld [vmem:[%s1982_s1 + $0x18] sm:$0xff]  ;;  %vm1509_vm0 = vmmov 0   ;;  %v1510_v38 = vmov 1.0|1.0  }
  0x4d   :  { %1232 = vmatprep.subr.bf16.mxu1 %v1508_v1  ;;  %105 = vperm.xlu0 %1338, %v100_v2   ;;  %v101_v7 = vld [vmem:[%s1981_s0 + $0x8] sm:$0xff]  ;;  %v133_v8 = vpack.c.bf16 %v118_v4, %v117_v3  ;;  %v134_v9 = vpack.c.bf16 %v120_v6, %v119_v5  ;;  %v121_v10 = vld [vmem:[%s1982_s1 + $0x20] sm:$0xff]  ;;  %v199_v16 = vld [vmem:[#allocation7 + $0x18] sm:$0xff]  ;;  %v103_v36 = vand.u32 127, %v102_v34  ;;  %v1511_v50 = vmov 0.5   ;;  %s1513_s17 = smov 32  }
  0x4e   :  { %v122_v11 = vld [vmem:[%s1982_s1 + $0x28] sm:$0xff]  ;;  %1228 = vmatprep.mubr.msk.bf16.mxu0 %vm1509_vm0, %v1508_v1  ;;  %v196_v12 = vld [vmem:[#allocation7] sm:$0xff]  ;;  %1236 = vmatprep.mubr.msk.bf16.mxu1 %vm1509_vm0, %v1508_v1  ;;  %v123_v18 = vld [vmem:[%s1982_s1 + $0x30] sm:$0xff]  ;;  %vm203_vm7 = vcmask 261120   ;;  %vm273_vm8 = vcmask 254976   ;;  %vm909_vm9 = vcmask 523264  }
  0x4f   :  { %1213 = vmatpush3.bf16.msra.mxu0 %v133_v8  ;;  %v197_v13 = vld [vmem:[#allocation7 + $0x8] sm:$0xff]  ;;  %v198_v15 = vld [vmem:[#allocation7 + $0x10] sm:$0xff]  ;;  %v135_v17 = vpack.c.bf16 %v122_v11, %v121_v10  ;;  %v124_v19 = vld [vmem:[%s1982_s1 + $0x38] sm:$0xff]  ;;  %vm191_vm4 = vcmp.ge.s32.totalorder %v103_v36, 64  ;;  %vm192_vm5 = vcmp.lt.s32.totalorder %v103_v36, 96  ;;  %s1514_s20 = smov [#allocation12]  }
  0x50   :  { %1214 = vmatprep.subr.bf16.mxu0 %v1508_v1  ;;  %v1675_v14 = vpack.c.bf16 %v197_v13, %v196_v12  ;;  %v1685_v20 = vpack.c.bf16 %v199_v16, %v198_v15  ;;  %v136_v21 = vpack.c.bf16 %v124_v19, %v123_v18  ;;  %v125_v22 = vld [vmem:[%s1982_s1 + $0x40] sm:$0xff]  ;;  %v126_v23 = vld [vmem:[%s1982_s1 + $0x48] sm:$0xff]  ;;  %v127_v25 = vld [vmem:[%s1982_s1 + $0x50] sm:$0xff]  ;;  %s1136_s21 = sshll.u32 %s1514_s20, 4  ;;  %vm1128_vm10 = vcmask 17408   ;;  %s1137_s21 = int_to_ptr.vmem [resolvable:$true] %s1136_s21 }
  0x51   :  { %108 = vperm.xlu0 %1338, %v101_v7   ;;  %v137_v24 = vpack.c.bf16 %v126_v23, %v125_v22  ;;  %v128_v26 = vld [vmem:[%s1982_s1 + $0x58] sm:$0xff]  ;;  %v129_v28 = vld [vmem:[%s1982_s1 + $0x60] sm:$0xff]  ;;  %v130_v29 = vld [vmem:[%s1982_s1 + $0x68] sm:$0xff]  ;;  %s1471_s22 = scalar_lea.vmem %s1137_s21, 32  ;;  %p1476_p5 = scmp.lt.s32.totalorder %s1137_s21, %s1137_s21 }
  0x52   :  { %1233 = vmatpush3.bf16.msra.mxu1 %v1675_v14  ;;  %v138_v27 = vpack.c.bf16 %v128_v26, %v127_v25  ;;  %v139_v30 = vpack.c.bf16 %v130_v29, %v129_v28  ;;  %v131_v31 = vld [vmem:[%s1982_s1 + $0x70] sm:$0xff]  ;;  %v132_v32 = vld [vmem:[%s1982_s1 + $0x78] sm:$0xff]  ;;  %vm193_vm6 = vmand %vm191_vm4, %vm192_vm5  ;;  %s1512_s1 = smov 64   ;;  %p1472_p4 = scmp.ne.s32.totalorder %s1137_s21, %s1471_s22 }
  0x53   :  { %1215 = vmatpush3.bf16.msra.mxu0 %v134_v9  ;;  %1234 = vmatprep.subr.bf16.mxu1 %v1508_v1  ;;  %v140_v33 = vpack.c.bf16 %v132_v32, %v131_v31  ;;  %v1149_v43 = vld [vmem:[#allocation4] ss:$0 sm:$0xff]  ;;  %v1733_v51 = vsel %vm193_vm6, 1.0, %v1511_v50  ;;  %v1736_v56 = vsel %vm193_vm6, 0.0, %v1511_v50  ;;  %p1477_p6 = scmp.lt.s32.totalorder %s1471_s22, %s1471_s22 }
  0x54   :  { %1216 = vmatprep.subr.bf16.mxu0 %v1508_v1 }
  0x55   :  { %p1478_p7 = por %p1477_p6, %p1476_p5 }
  0x56   :  { %1235 = vmatpush3.bf16.msra.mxu1 %v1685_v20 }
  0x57   :  { %1217 = vmatpush3.bf16.msra.mxu0 %v135_v17  ;;  %1240 = vmatprep.subr.bf16.mxu1 %v1508_v1  ;;  %p1479_p8 = pnand %p1478_p7, %p1472_p4 }
  0x58   :  { %1218 = vmatprep.subr.bf16.mxu0 %v1508_v1 }
  0x59   :  { %1237 = vmatmul.mubr.bf16.vlgmr.msra.gmra.mrb[0].mxu1 %v1507_v0 }
  0x5a   :  { %1241 = vmatpush3.bf16.msra.mxu1 %v1675_v14  ;;  %1244 = vmatprep.mubr.msk.bf16.mxu1 %vm1509_vm0, %v1508_v1 }
  0x5b   :  { %1219 = vmatpush3.bf16.msra.mxu0 %v136_v21  ;;  %1242 = vmatprep.subr.bf16.mxu1 %v1508_v1 }
  0x5c   :  { %1220 = vmatprep.subr.bf16.mxu0 %v1508_v1 }
  0x5e   :  { %1243 = vmatpush3.bf16.msra.mxu1 %v1685_v20 }
  0x5f   :  { %1221 = vmatpush3.bf16.msra.mxu0 %v137_v24  ;;  %1248 = vmatprep.subr.bf16.mxu1 %v1508_v1 }
  0x60   :  { %1222 = vmatprep.subr.bf16.mxu0 %v1508_v1 }
  0x63   :  { %1223 = vmatpush3.bf16.msra.mxu0 %v138_v27 }
  0x64   :  { %1224 = vmatprep.subr.bf16.mxu0 %v1508_v1 }
  0x67   :  { %1225 = vmatpush3.bf16.msra.mxu0 %v139_v30 }
  0x68   :  { %1226 = vmatprep.subr.bf16.mxu0 %v1508_v1 }
  0x6b   :  { %1227 = vmatpush3.bf16.msra.mxu0 %v140_v33 }
  0x6c   :  { %1264 = vmatprep.subr.bf16.mxu0 %v1508_v1 }
  0xcc   :  { %v106_v35 = vpop.permute.xlu0 %105 }
  0xcd   :  { %vm110_vm1 = vcmp.eq.s32.totalorder %v103_v36, %v106_v35 }
  0xd0   :  { %v109_v37 = vpop.permute.xlu0 %108 }
  0xd1   :  { %vm111_vm2 = vcmp.eq.s32.totalorder %v103_v36, %v109_v37 }
  0xd2   :  { %vm1150_vm3 = vmpackc.low %vm111_vm2, %vm110_vm1 }
  0xd3   :  { %1229 = vmatmul.mubr.msk.bf16.vlgmr.msra.gmra.mrb[0].mxu0 %vm1150_vm3, %v1510_v38 }
  0xd4   :  { %1265 = vmatpush3.bf16.msra.mxu0 %v1675_v14  ;;  %1268 = vmatprep.mubr.msk.bf16.mxu0 %vm1509_vm0, %v1508_v1 }
  0xd5   :  { %1266 = vmatprep.subr.bf16.mxu0 %v1508_v1 }
  0xd8   :  { %1267 = vmatpush3.bf16.msra.mxu0 %v1685_v20 }
  0xd9   :  { %1280 = vmatprep.subr.bf16.mxu0 %v1508_v1 }
 0x12c   :  { %v241_v39 = vpop.f32.mrb[0].mxu1 }
 0x12d   :  { %v1238_v40 = vpop.f32.mrb[1].mxu1 }
 0x12e   :  { %v244_v41 = vpop.f32.mrb[2].mxu1 }
 0x12f   :  { %v1239_v42 = vpop.f32.mrb[3].mxu1 }
 0x1a6   :  { %v182_v44 = vpop.f32.mrb[0].mxu0 }
 0x1a7   :  { %v183_v45 = vadd.f32 %v1149_v43, %v182_v44  ;;  %v1230_v46 = vpop.f32.mrb[1].mxu0 }
 0x1a8   :  { %v185_v47 = vpop.f32.mrb[2].mxu0 }
 0x1a9   :  { %189 = vst [vmem:[#allocation2] sm:$0xff] %v183_v45  ;;  %v186_v48 = vadd.f32 %v1149_v43, %v185_v47  ;;  %v1231_v49 = vpop.f32.mrb[3].mxu0 }
 0x1ab   :  { %190 = vst [vmem:[#allocation2 + $0x8] sm:$0xff] %v186_v48 }
 0x1b0   :  { %v202_v52 = vld [vmem:[#allocation2] sm:$0x3]  ;;  %v275_v6 = vld [vmem:[#allocation2 + $0x2] sm:$0x3]  ;;  %v350_v28 = vld [vmem:[#allocation2 + $0x4] sm:$0x3] }
 0x1b1   :  { %v247_v53 = vadd.f32 %v241_v39, %v202_v52  ;;  %v425_v49 = vld [vmem:[#allocation2 + $0x6] sm:$0x3] }
 0x1b3   :  { %v248_v54 = vmul.f32 %v247_v53, %v1733_v51 }
 0x1b5   :  { %1339 = vtanh.f32 %v248_v54 }
 0x1bf   :  { %v1340_v55 = vpop.eup %1339 }
 0x1c0   :  { %v250_v57 = vmul.f32 %v1340_v55, %v1733_v51 }
 0x1c2   :  { %v251_v58 = vadd.f32 %v250_v57, %v1736_v56 }
 0x1c4   :  { %254 = vrot.lane.b32.xlu1 %v251_v58, %s1512_s1  ;;  %v252_v61 = vmul.f32 0.0, %v251_v58 }
 0x236   :  { %v255_v59 = vpop.permute.xlu1 %254 }
 0x237   :  { %v257_v60 = vmul.f32 %v255_v59, %v251_v58 }
 0x239   :  { %259 = vrot.lane.b32.xlu1 %v257_v60, %s1513_s17 }
 0x2ab   :  { %v260_v62 = vpop.permute.xlu1 %259 }
 0x2ac   :  { %v262_v63 = vadd.f32 %v260_v62, %v252_v61 }
 0x2ae   :  { %1341 = vtanh.f32 %v262_v63 }
 0x2b8   :  { %v1342_v0 = vpop.eup %1341 }
 0x2b9   :  { %265 = vrot.lane.b32.xlu0 %v1342_v0, %s1512_s1 }
 0x32b   :  { %v266_v2 = vpop.permute.xlu0 %265 }
 0x32c   :  { %v1743_v3 = vmul.f32 %v266_v2, %v251_v58 }
 0x32e   :  { %v276_v4 = vpack.c.bf16 %v1743_v3, %v1743_v3 }
 0x330   :  { %278 = vrot.lane.b32.xlu1 %v276_v4, %s1513_s17 }
 0x3a2   :  { %v279_v5 = vpop.permute.xlu1 %278 }
 0x3a3   :  { %1245 = vmatmul.mubr.msk.bf16.vlgmr.msra.gmra.mrb[4].mxu1 %vm203_vm7, %v279_v5 }
 0x3a4   :  { %1249 = vmatpush3.bf16.msra.mxu1 %v1675_v14  ;;  %1252 = vmatprep.mubr.msk.bf16.mxu1 %vm1509_vm0, %v1508_v1 }
 0x3a5   :  { %1250 = vmatprep.subr.bf16.mxu1 %v1508_v1 }
 0x3a8   :  { %1251 = vmatpush3.bf16.msra.mxu1 %v1685_v20 }
 0x3a9   :  { %1256 = vmatprep.subr.bf16.mxu1 %v1508_v1 }
 0x476   :  { %v317_v7 = vpop.f32.mrb[4].mxu1 }
 0x477   :  { %v323_v8 = vadd.f32 %v317_v7, %v275_v6  ;;  %v1246_v9 = vpop.f32.mrb[5].mxu1 }
 0x478   :  { %v320_v10 = vpop.f32.mrb[6].mxu1  ;;  %v500_v9 = vld [vmem:[#allocation2 + $0x8] sm:$0x3] }
 0x479   :  { %v324_v11 = vmul.f32 %v323_v8, %v1733_v51  ;;  %v1247_v12 = vpop.f32.mrb[7].mxu1 }
 0x47b   :  { %1343 = vtanh.f32 %v324_v11 }
 0x485   :  { %v1344_v13 = vpop.eup %1343 }
 0x486   :  { %v326_v15 = vmul.f32 %v1344_v13, %v1733_v51 }
 0x488   :  { %v327_v16 = vadd.f32 %v326_v15, %v1736_v56 }
 0x48a   :  { %330 = vrot.lane.b32.xlu0 %v327_v16, %s1512_s1  ;;  %v328_v19 = vmul.f32 %v327_v16, %v262_v63 }
 0x4fc   :  { %v331_v17 = vpop.permute.xlu0 %330 }
 0x4fd   :  { %v333_v18 = vmul.f32 %v331_v17, %v327_v16 }
 0x4ff   :  { %335 = vrot.lane.b32.xlu1 %v333_v18, %s1513_s17 }
 0x571   :  { %v336_v21 = vpop.permute.xlu1 %335 }
 0x572   :  { %v338_v22 = vadd.f32 %v336_v21, %v328_v19 }
 0x574   :  { %1345 = vtanh.f32 %v338_v22 }
 0x57e   :  { %v1346_v23 = vpop.eup %1345 }
 0x57f   :  { %341 = vrot.lane.b32.xlu0 %v1346_v23, %s1512_s1 }
 0x5f1   :  { %v342_v24 = vpop.permute.xlu0 %341 }
 0x5f2   :  { %v1761_v25 = vmul.f32 %v342_v24, %v327_v16 }
 0x5f4   :  { %v351_v26 = vpack.c.bf16 %v1761_v25, %v1761_v25 }
 0x5f6   :  { %353 = vrot.lane.b32.xlu1 %v351_v26, %s1513_s17 }
 0x668   :  { %v354_v27 = vpop.permute.xlu1 %353 }
 0x669   :  { %1253 = vmatmul.mubr.msk.bf16.vlgmr.msra.gmra.mrb[8].mxu1 %vm203_vm7, %v354_v27 }
 0x66a   :  { %1257 = vmatpush3.bf16.msra.mxu1 %v1675_v14  ;;  %1260 = vmatprep.mubr.msk.bf16.mxu1 %vm1509_vm0, %v1508_v1 }
 0x66b   :  { %1258 = vmatprep.subr.bf16.mxu1 %v1508_v1 }
 0x66e   :  { %1259 = vmatpush3.bf16.msra.mxu1 %v1685_v20 }
 0x66f   :  { %1272 = vmatprep.subr.bf16.mxu1 %v1508_v1 }
 0x73c   :  { %v392_v29 = vpop.f32.mrb[8].mxu1 }
 0x73d   :  { %v398_v30 = vadd.f32 %v392_v29, %v350_v28  ;;  %v1254_v31 = vpop.f32.mrb[9].mxu1 }
 0x73e   :  { %v395_v32 = vpop.f32.mrb[10].mxu1 }
 0x73f   :  { %v399_v33 = vmul.f32 %v398_v30, %v1733_v51  ;;  %v1255_v35 = vpop.f32.mrb[11].mxu1  ;;  %v575_v32 = vld [vmem:[#allocation2 + $0xa] sm:$0x3] }
 0x741   :  { %1347 = vtanh.f32 %v399_v33 }
 0x74b   :  { %v1348_v36 = vpop.eup %1347 }
 0x74c   :  { %v401_v37 = vmul.f32 %v1348_v36, %v1733_v51 }
 0x74e   :  { %v402_v38 = vadd.f32 %v401_v37, %v1736_v56 }
 0x750   :  { %405 = vrot.lane.b32.xlu0 %v402_v38, %s1512_s1  ;;  %v403_v41 = vmul.f32 %v402_v38, %v338_v22 }
 0x7c2   :  { %v406_v39 = vpop.permute.xlu0 %405 }
 0x7c3   :  { %v408_v40 = vmul.f32 %v406_v39, %v402_v38 }
 0x7c5   :  { %410 = vrot.lane.b32.xlu1 %v408_v40, %s1513_s17 }
 0x837   :  { %v411_v42 = vpop.permute.xlu1 %410 }
 0x838   :  { %v413_v43 = vadd.f32 %v411_v42, %v403_v41 }
 0x83a   :  { %1349 = vtanh.f32 %v413_v43 }
 0x844   :  { %v1350_v44 = vpop.eup %1349 }
 0x845   :  { %416 = vrot.lane.b32.xlu0 %v1350_v44, %s1512_s1 }
 0x8b7   :  { %v417_v45 = vpop.permute.xlu0 %416 }
 0x8b8   :  { %v1779_v46 = vmul.f32 %v417_v45, %v402_v38 }
 0x8ba   :  { %v426_v47 = vpack.c.bf16 %v1779_v46, %v1779_v46 }
 0x8bc   :  { %428 = vrot.lane.b32.xlu1 %v426_v47, %s1513_s17 }
 0x92e   :  { %v429_v48 = vpop.permute.xlu1 %428 }
 0x92f   :  { %1261 = vmatmul.mubr.msk.bf16.vlgmr.msra.gmra.mrb[12].mxu1 %vm203_vm7, %v429_v48 }
 0x930   :  { %1273 = vmatpush3.bf16.msra.mxu1 %v1675_v14  ;;  %1276 = vmatprep.mubr.msk.bf16.mxu1 %vm1509_vm0, %v1508_v1 }
 0x931   :  { %1274 = vmatprep.subr.bf16.mxu1 %v1508_v1 }
 0x934   :  { %1275 = vmatpush3.bf16.msra.mxu1 %v1685_v20 }
 0x935   :  { %1288 = vmatprep.subr.bf16.mxu1 %v1508_v1 }
 0xa02   :  { %v467_v50 = vpop.f32.mrb[12].mxu1 }
 0xa03   :  { %v473_v52 = vadd.f32 %v467_v50, %v425_v49  ;;  %v1262_v53 = vpop.f32.mrb[13].mxu1 }
 0xa04   :  { %v470_v54 = vpop.f32.mrb[14].mxu1  ;;  %v650_v53 = vld [vmem:[#allocation2 + $0xc] sm:$0x3] }
 0xa05   :  { %v474_v55 = vmul.f32 %v473_v52, %v1733_v51  ;;  %v1263_v57 = vpop.f32.mrb[15].mxu1 }
 0xa07   :  { %1351 = vtanh.f32 %v474_v55 }
 0xa11   :  { %v1352_v58 = vpop.eup %1351 }
 0xa12   :  { %v476_v59 = vmul.f32 %v1352_v58, %v1733_v51 }
 0xa14   :  { %v477_v60 = vadd.f32 %v476_v59, %v1736_v56 }
 0xa16   :  { %480 = vrot.lane.b32.xlu0 %v477_v60, %s1512_s1  ;;  %v478_v63 = vmul.f32 %v477_v60, %v413_v43 }
 0xa88   :  { %v481_v61 = vpop.permute.xlu0 %480 }
 0xa89   :  { %v483_v62 = vmul.f32 %v481_v61, %v477_v60 }
 0xa8b   :  { %485 = vrot.lane.b32.xlu1 %v483_v62, %s1513_s17 }
 0xafd   :  { %v486_v0 = vpop.permute.xlu1 %485 }
 0xafe   :  { %v488_v2 = vadd.f32 %v486_v0, %v478_v63 }
 0xb00   :  { %1353 = vtanh.f32 %v488_v2 }
 0xb0a   :  { %v1354_v4 = vpop.eup %1353 }
 0xb0b   :  { %491 = vrot.lane.b32.xlu0 %v1354_v4, %s1512_s1 }
 0xb7d   :  { %v492_v5 = vpop.permute.xlu0 %491 }
 0xb7e   :  { %v1797_v6 = vmul.f32 %v492_v5, %v477_v60 }
 0xb80   :  { %v501_v7 = vpack.c.bf16 %v1797_v6, %v1797_v6 }
 0xb82   :  { %503 = vrot.lane.b32.xlu1 %v501_v7, %s1513_s17 }
 0xbf4   :  { %v504_v8 = vpop.permute.xlu1 %503 }
 0xbf5   :  { %1269 = vmatmul.mubr.msk.bf16.vlgmr.msra.gmra.mrb[4].mxu0 %vm203_vm7, %v504_v8 }
 0xbf6   :  { %1281 = vmatpush3.bf16.msra.mxu0 %v1675_v14  ;;  %1284 = vmatprep.mubr.msk.bf16.mxu0 %vm1509_vm0, %v1508_v1 }
 0xbf7   :  { %1282 = vmatprep.subr.bf16.mxu0 %v1508_v1 }
 0xbfa   :  { %1283 = vmatpush3.bf16.msra.mxu0 %v1685_v20 }
 0xbfb   :  { %1296 = vmatprep.subr.bf16.mxu0 %v1508_v1 }
 0xcc8   :  { %v542_v10 = vpop.f32.mrb[4].mxu0 }
 0xcc9   :  { %v548_v11 = vadd.f32 %v542_v10, %v500_v9  ;;  %v1270_v12 = vpop.f32.mrb[5].mxu0 }
 0xcca   :  { %v545_v13 = vpop.f32.mrb[6].mxu0 }
 0xccb   :  { %v549_v15 = vmul.f32 %v548_v11, %v1733_v51  ;;  %v1271_v16 = vpop.f32.mrb[7].mxu0  ;;  %v725_v13 = vld [vmem:[#allocation2 + $0xe] sm:$0x3] }
 0xccd   :  { %1355 = vtanh.f32 %v549_v15 }
 0xcd7   :  { %v1356_v17 = vpop.eup %1355 }
 0xcd8   :  { %v551_v18 = vmul.f32 %v1356_v17, %v1733_v51 }
 0xcda   :  { %v552_v19 = vadd.f32 %v551_v18, %v1736_v56 }
 0xcdc   :  { %555 = vrot.lane.b32.xlu0 %v552_v19, %s1512_s1  ;;  %v553_v23 = vmul.f32 %v552_v19, %v488_v2 }
 0xd4e   :  { %v556_v21 = vpop.permute.xlu0 %555 }
 0xd4f   :  { %v558_v22 = vmul.f32 %v556_v21, %v552_v19 }
 0xd51   :  { %560 = vrot.lane.b32.xlu1 %v558_v22, %s1513_s17 }
 0xdc3   :  { %v561_v24 = vpop.permute.xlu1 %560 }
 0xdc4   :  { %v563_v26 = vadd.f32 %v561_v24, %v553_v23 }
 0xdc6   :  { %1357 = vtanh.f32 %v563_v26 }
 0xdd0   :  { %v1358_v27 = vpop.eup %1357 }
 0xdd1   :  { %566 = vrot.lane.b32.xlu0 %v1358_v27, %s1512_s1 }
 0xe43   :  { %v567_v28 = vpop.permute.xlu0 %566 }
 0xe44   :  { %v1815_v29 = vmul.f32 %v567_v28, %v552_v19 }
 0xe46   :  { %v576_v30 = vpack.c.bf16 %v1815_v29, %v1815_v29 }
 0xe48   :  { %578 = vrot.lane.b32.xlu1 %v576_v30, %s1513_s17 }
 0xeba   :  { %v579_v31 = vpop.permute.xlu1 %578 }
 0xebb   :  { %1277 = vmatmul.mubr.msk.bf16.vlgmr.msra.gmra.mrb[16].mxu1 %vm203_vm7, %v579_v31 }
 0xebc   :  { %1289 = vmatpush3.bf16.msra.mxu1 %v1675_v14  ;;  %1292 = vmatprep.mubr.msk.bf16.mxu1 %vm1509_vm0, %v1508_v1 }
 0xebd   :  { %1290 = vmatprep.subr.bf16.mxu1 %v1508_v1 }
 0xec0   :  { %1291 = vmatpush3.bf16.msra.mxu1 %v1685_v20 }
 0xec1   :  { %1304 = vmatprep.subr.bf16.mxu1 %v1508_v1 }
 0xf8e   :  { %v617_v33 = vpop.f32.mrb[16].mxu1 }
 0xf8f   :  { %v623_v35 = vadd.f32 %v617_v33, %v575_v32  ;;  %v1278_v36 = vpop.f32.mrb[17].mxu1 }
 0xf90   :  { %v620_v37 = vpop.f32.mrb[18].mxu1 }
 0xf91   :  { %v624_v38 = vmul.f32 %v623_v35, %v1733_v51  ;;  %v1279_v39 = vpop.f32.mrb[19].mxu1 }
 0xf93   :  { %1359 = vtanh.f32 %v624_v38 }
 0xf9d   :  { %v1360_v40 = vpop.eup %1359 }
 0xf9e   :  { %v626_v14 = vmul.f32 %v1360_v40, %v1733_v51 }
 0xfa0   :  { %v627_v41 = vadd.f32 %v626_v14, %v1736_v56 }
 0xfa2   :  { %630 = vrot.lane.b32.xlu0 %v627_v41, %s1512_s1  ;;  %v628_v43 = vmul.f32 %v627_v41, %v563_v26 }
0x1014   :  { %v631_v42 = vpop.permute.xlu0 %630 }
0x1015   :  { %v633_v20 = vmul.f32 %v631_v42, %v627_v41 }
0x1017   :  { %635 = vrot.lane.b32.xlu1 %v633_v20, %s1513_s17 }
0x1089   :  { %v636_v44 = vpop.permute.xlu1 %635 }
0x108a   :  { %v638_v45 = vadd.f32 %v636_v44, %v628_v43 }
0x108c   :  { %1361 = vtanh.f32 %v638_v45 }
0x1096   :  { %v1362_v47 = vpop.eup %1361 }
0x1097   :  { %641 = vrot.lane.b32.xlu0 %v1362_v47, %s1512_s1 }
0x1109   :  { %v642_v48 = vpop.permute.xlu0 %641 }
0x110a   :  { %v1833_v49 = vmul.f32 %v642_v48, %v627_v41 }
0x110c   :  { %v651_v50 = vpack.c.bf16 %v1833_v49, %v1833_v49 }
0x110e   :  { %653 = vrot.lane.b32.xlu1 %v651_v50, %s1513_s17  ;;  %v847_v50 = vld [vmem:[#allocation10] sm:$0xff] }
0x1180   :  { %v654_v52 = vpop.permute.xlu1 %653 }
0x1181   :  { %1285 = vmatmul.mubr.msk.bf16.vlgmr.msra.gmra.mrb[8].mxu0 %vm203_vm7, %v654_v52  ;;  %v848_v52 = vld [vmem:[#allocation10 + $0x8] sm:$0xff] }
0x1182   :  { %1300 = vmatprep.mubr.msk.bf16.mxu0 %vm1509_vm0, %v1508_v1 }
0x1254   :  { %v692_v54 = vpop.f32.mrb[8].mxu0 }
0x1255   :  { %v698_v55 = vadd.f32 %v692_v54, %v650_v53  ;;  %v1286_v57 = vpop.f32.mrb[9].mxu0  ;;  %v852_v53 = vpack.c.bf16 %v848_v52, %v847_v50  ;;  %v849_v54 = vld [vmem:[#allocation10 + $0x10] sm:$0xff]  ;;  %v1163_v52 = vld [vmem:[%s1987_s6] ss:$0 sm:$0xff] }
0x1256   :  { %v695_v58 = vpop.f32.mrb[10].mxu0 }
0x1257   :  { %v699_v59 = vmul.f32 %v698_v55, %v1733_v51  ;;  %v1287_v60 = vpop.f32.mrb[11].mxu0  ;;  %1297 = vmatpush3.bf16.msra.mxu0 %v852_v53  ;;  %v850_v55 = vld [vmem:[#allocation10 + $0x18] sm:$0xff] }
0x1258   :  { %1298 = vmatprep.subr.bf16.mxu0 %v1508_v1  ;;  %v853_v57 = vpack.c.bf16 %v850_v55, %v849_v54 }
0x1259   :  { %1363 = vtanh.f32 %v699_v59 }
0x125b   :  { %1299 = vmatpush3.bf16.msra.mxu0 %v853_v57 }
0x125c   :  { %1316 = vmatprep.subr.bf16.mxu0 %v1508_v1 }
0x1263   :  { %v1364_v61 = vpop.eup %1363 }
0x1264   :  { %v701_v62 = vmul.f32 %v1364_v61, %v1733_v51 }
0x1266   :  { %v702_v63 = vadd.f32 %v701_v62, %v1736_v56 }
0x1268   :  { %705 = vrot.lane.b32.xlu0 %v702_v63, %s1512_s1  ;;  %v703_v4 = vmul.f32 %v702_v63, %v638_v45 }
0x12da   :  { %v706_v0 = vpop.permute.xlu0 %705 }
0x12db   :  { %v708_v2 = vmul.f32 %v706_v0, %v702_v63 }
0x12dd   :  { %710 = vrot.lane.b32.xlu1 %v708_v2, %s1513_s17 }
0x134f   :  { %v711_v5 = vpop.permute.xlu1 %710 }
0x1350   :  { %v713_v7 = vadd.f32 %v711_v5, %v703_v4  ;;  %v1885_v4 = vld [vmem:[#allocation9] ss:$0 sm:$0xff] }
0x1352   :  { %1365 = vtanh.f32 %v713_v7 }
0x135c   :  { %v1366_v8 = vpop.eup %1365 }
0x135d   :  { %716 = vrot.lane.b32.xlu0 %v1366_v8, %s1512_s1 }
0x13cf   :  { %v717_v9 = vpop.permute.xlu0 %716 }
0x13d0   :  { %v719_v10 = vmul.f32 %v717_v9, %v702_v63  ;;  %v1891_v9 = vld [vmem:[%s1986_s5] ss:$0 sm:$0xff] }
0x13d2   :  { %v726_v11 = vpack.c.bf16 %v719_v10, %v719_v10 }
0x13d4   :  { %728 = vrot.lane.b32.xlu1 %v726_v11, %s1513_s17 }
0x1446   :  { %v729_v12 = vpop.permute.xlu1 %728 }
0x1447   :  { %1293 = vmatmul.mubr.msk.bf16.vlgmr.msra.gmra.mrb[20].mxu1 %vm203_vm7, %v729_v12 }
0x1448   :  { %1312 = vmatprep.mubr.msk.bf16.mxu1 %vm1509_vm0, %v1508_v1 }
0x151a   :  { %v767_v15 = vpop.f32.mrb[20].mxu1 }
0x151b   :  { %v773_v16 = vadd.f32 %v767_v15, %v725_v13  ;;  %v1294_v17 = vpop.f32.mrb[21].mxu1  ;;  %v1161_v15 = vld [vmem:[%s1990_s9] ss:$0 sm:$0xff] }
0x151c   :  { %v770_v18 = vpop.f32.mrb[22].mxu1 }
0x151d   :  { %v774_v19 = vmul.f32 %v773_v16, %v1733_v51  ;;  %v1295_v21 = vpop.f32.mrb[23].mxu1 }
0x151f   :  { %1367 = vtanh.f32 %v774_v19 }
0x1529   :  { %v1368_v22 = vpop.eup %1367 }
0x152a   :  { %v776_v23 = vmul.f32 %v1368_v22, %v1733_v51 }
0x152c   :  { %v777_v24 = vadd.f32 %v776_v23, %v1736_v56 }
0x152e   :  { %780 = vrot.lane.b32.xlu0 %v777_v24, %s1512_s1  ;;  %v778_v51 = vmul.f32 %v777_v24, %v713_v7 }
0x15a0   :  { %v781_v26 = vpop.permute.xlu0 %780 }
0x15a1   :  { %v783_v27 = vmul.f32 %v781_v26, %v777_v24 }
0x15a3   :  { %785 = vrot.lane.b32.xlu1 %v783_v27, %s1513_s17 }
0x15a7   :  { %270 = vrot.lane.b32.xlu1 %v1743_v3, %s1513_s17 }
0x15ab   :  { %421 = vrot.lane.b32.xlu1 %v1779_v46, %s1513_s17 }
0x15af   :  { %571 = vrot.lane.b32.xlu1 %v1815_v29, %s1513_s17 }
0x15b3   :  { %721 = vrot.lane.b32.xlu1 %v719_v10, %s1513_s17 }
0x1615   :  { %v786_v28 = vpop.permute.xlu1 %785 }
0x1616   :  { %v788_v56 = vadd.f32 %v786_v28, %v778_v51 }
0x1618   :  { %1369 = vtanh.f32 %v788_v56 }
0x1619   :  { %v271_v30 = vpop.permute.xlu1 %270 }
0x161a   :  { %274 = vst.msk [vmem:[#allocation3] sm:$0x3] %vm273_vm8, %v271_v30 }
0x161d   :  { %v422_v31 = vpop.permute.xlu1 %421 }
0x161e   :  { %424 = vst.msk [vmem:[#allocation3 + $0x4] sm:$0x3] %vm273_vm8, %v422_v31 }
0x1621   :  { %v572_v3 = vpop.permute.xlu1 %571 }
0x1622   :  { %v1370_v32 = vpop.eup %1369  ;;  %574 = vst.msk [vmem:[#allocation3 + $0x8] sm:$0x3] %vm273_vm8, %v572_v3 }
0x1623   :  { %791 = vrot.lane.b32.xlu0 %v1370_v32, %s1512_s1 }
0x1625   :  { %v722_v46 = vpop.permute.xlu1 %721 }
0x1626   :  { %724 = vst.msk [vmem:[#allocation3 + $0xc] sm:$0x3] %vm273_vm8, %v722_v46 }
0x1627   :  { %346 = vrot.lane.b32.xlu0 %v1761_v25, %s1513_s17 }
0x162b   :  { %496 = vrot.lane.b32.xlu0 %v1797_v6, %s1513_s17 }
0x162f   :  { %646 = vrot.lane.b32.xlu0 %v1833_v49, %s1513_s17 }
0x1695   :  { %v792_v29 = vpop.permute.xlu0 %791 }
0x1696   :  { %v794_v33 = vmul.f32 %v792_v29, %v777_v24 }
0x1698   :  { %796 = vrot.lane.b32.xlu0 %v794_v33, %s1513_s17 }
0x1699   :  { %v347_v35 = vpop.permute.xlu0 %346 }
0x169a   :  { %349 = vst.msk [vmem:[#allocation3 + $0x2] sm:$0x3] %vm273_vm8, %v347_v35  ;;  %v953_v35 = vld [vmem:[%s1991_s10] sm:$0xff] }
0x169d   :  { %v497_v36 = vpop.permute.xlu0 %496 }
0x169e   :  { %499 = vst.msk [vmem:[#allocation3 + $0x6] sm:$0x3] %vm273_vm8, %v497_v36  ;;  %v954_v36 = vld [vmem:[%s1991_s10 + $0x8] sm:$0xff] }
0x16a1   :  { %v647_v37 = vpop.permute.xlu0 %646 }
0x16a2   :  { %649 = vst.msk [vmem:[#allocation3 + $0xa] sm:$0x3] %vm273_vm8, %v647_v37  ;;  %v962_v37 = vpack.c.bf16 %v954_v36, %v953_v35 }
0x16a4   :  { %1305 = vmatpush3.bf16.msra.mxu1 %v962_v37 }
0x16a5   :  { %v800_v25 = vld [vmem:[#allocation3] sm:$0xff]  ;;  %1306 = vmatprep.subr.bf16.mxu1 %v1508_v1 }
0x16a6   :  { %v804_v38 = vsel %vm203_vm7, %v800_v25, 0.0 }
0x16a7   :  { %805 = vadd.xlane.f32.xlu1 %v804_v38  ;;  %v956_v38 = vld [vmem:[%s1991_s10 + $0x18] sm:$0xff] }
0x170a   :  { %v797_v6 = vpop.permute.xlu0 %796 }
0x170b   :  { %799 = vst.msk [vmem:[#allocation3 + $0xe] sm:$0x3] %vm273_vm8, %v797_v6 }
0x1712   :  { %v801_v39 = vld [vmem:[#allocation3 + $0x8] sm:$0xff] }
0x1713   :  { %v807_v40 = vsel %vm203_vm7, %v801_v39, 0.0 }
0x1714   :  { %808 = vadd.xlane.f32.xlu0 %v807_v40  ;;  %v958_v40 = vld [vmem:[%s1991_s10 + $0x28] sm:$0xff] }
0x1734   :  { %v806_v14 = vpop.xlane.xlu1 %805 }
0x1735   :  { %v811_v41 = vmul.f32 0.03125, %v806_v14 }
0x1737   :  { %v813_v42 = vsub.f32 %v800_v25, %v811_v41  ;;  %v955_v25 = vld [vmem:[%s1991_s10 + $0x10] sm:$0xff] }
0x1738   :  { %v963_v6 = vpack.c.bf16 %v956_v38, %v955_v25  ;;  %v959_v41 = vld [vmem:[%s1991_s10 + $0x30] sm:$0xff] }
0x1739   :  { %v815_v20 = vmul.f32 %v813_v42, %v813_v42 }
0x173a   :  { %1307 = vmatpush3.bf16.msra.mxu1 %v963_v6 }
0x173b   :  { %v817_v43 = vsel %vm203_vm7, %v815_v20, 0.0  ;;  %1308 = vmatprep.subr.bf16.mxu1 %v1508_v1 }
0x173c   :  { %818 = vadd.xlane.f32.xlu0 %v817_v43 }
0x17a1   :  { %v809_v44 = vpop.xlane.xlu0 %808 }
0x17a2   :  { %v812_v45 = vmul.f32 0.03125, %v809_v44 }
0x17a4   :  { %v814_v47 = vsub.f32 %v801_v39, %v812_v45  ;;  %v957_v39 = vld [vmem:[%s1991_s10 + $0x20] sm:$0xff] }
0x17a5   :  { %v964_v14 = vpack.c.bf16 %v958_v40, %v957_v39 }
0x17a6   :  { %v816_v48 = vmul.f32 %v814_v47, %v814_v47 }
0x17a7   :  { %1309 = vmatpush3.bf16.msra.mxu1 %v964_v14 }
0x17a8   :  { %v820_v49 = vsel %vm203_vm7, %v816_v48, 0.0  ;;  %1310 = vmatprep.subr.bf16.mxu1 %v1508_v1 }
0x17a9   :  { %821 = vadd.xlane.f32.xlu1 %v820_v49 }
0x17c9   :  { %v819_v58 = vpop.xlane.xlu0 %818 }
0x17ca   :  { %v823_v59 = vmul.f32 0.03125, %v819_v58  ;;  %v1164_v58 = vld [vmem:[%s1988_s7] ss:$0 sm:$0xff] }
0x17cc   :  { %v825_v60 = vadd.f32 1e-05, %v823_v59 }
0x17ce   :  { %1371 = vrsqrt.f32 %v825_v60 }
0x17d8   :  { %v1372_v0 = vpop.eup %1371 }
0x17d9   :  { %v829_v2 = vmul.f32 %v1372_v0, %v813_v42  ;;  %v960_v42 = vld [vmem:[%s1991_s10 + $0x38] sm:$0xff] }
0x17da   :  { %v965_v20 = vpack.c.bf16 %v960_v42, %v959_v41 }
0x17db   :  { %v837_v7 = vmul.f32 %v1885_v4, %v829_v2 }
0x17dc   :  { %1311 = vmatpush3.bf16.msra.mxu1 %v965_v20 }
0x17dd   :  { %v845_v11 = vadd.f32 %v1891_v9, %v837_v7 }
0x1836   :  { %v822_v61 = vpop.xlane.xlu1 %821 }
0x1837   :  { %v824_v62 = vmul.f32 0.03125, %v822_v61 }
0x1839   :  { %v826_v63 = vadd.f32 1e-05, %v824_v62 }
0x183b   :  { %1373 = vrsqrt.f32 %v826_v63  ;;  %v1165_v63 = vld [vmem:[%s1992_s11] ss:$0 sm:$0xff] }
0x1845   :  { %v1374_v5 = vpop.eup %1373 }
0x1846   :  { %v830_v8 = vmul.f32 %v1374_v5, %v814_v47 }
0x1848   :  { %v838_v10 = vmul.f32 %v1885_v4, %v830_v8 }
0x184a   :  { %v846_v12 = vadd.f32 %v1891_v9, %v838_v10 }
0x184c   :  { %v851_v13 = vpack.c.bf16 %v846_v12, %v845_v11 }
0x184e   :  { %1301 = vmatmul.mubr.msk.bf16.vlgmr.msra.gmra.mrb[12].mxu0 %vm203_vm7, %v851_v13 }
0x184f   :  { %1320 = vmatprep.mubr.msk.bf16.mxu0 %vm1509_vm0, %v1508_v1 }
0x1921   :  { %v898_v16 = vpop.f32.mrb[12].mxu0 }
0x1922   :  { %v899_v17 = vadd.f32 %v1161_v15, %v898_v16  ;;  %v1302_v18 = vpop.f32.mrb[13].mxu0 }
0x1923   :  { %v901_v19 = vpop.f32.mrb[14].mxu0 }
0x1924   :  { %v905_v21 = vmax.f32 %v899_v17, 0.0  ;;  %v902_v22 = vadd.f32 %v1161_v15, %v901_v19  ;;  %v1303_v23 = vpop.f32.mrb[15].mxu0 }
0x1926   :  { %v906_v24 = vmax.f32 %v902_v22, 0.0  ;;  %v910_v26 = vsel %vm909_vm9, %v905_v21, 0.0 }
0x1927   :  { %911 = vadd.xlane.f32.xlu0 %v910_v26 }
0x1928   :  { %v913_v27 = vsel %vm909_vm9, %v906_v24, 0.0 }
0x1929   :  { %914 = vadd.xlane.f32.xlu1 %v913_v27 }
0x19b4   :  { %v912_v51 = vpop.xlane.xlu0 %911 }
0x19b5   :  { %v917_v28 = vmul.f32 0.015625, %v912_v51  ;;  %v1070_v51 = vld [vmem:[%s1993_s12] sm:$0xff] }
0x19b6   :  { %v915_v56 = vpop.xlane.xlu1 %914 }
0x19b7   :  { %v919_v30 = vsub.f32 %v905_v21, %v917_v28  ;;  %v918_v31 = vmul.f32 0.015625, %v915_v56  ;;  %v1071_v28 = vld [vmem:[%s1993_s12 + $0x8] sm:$0xff]  ;;  %v1072_v56 = vld [vmem:[%s1993_s12 + $0x10] sm:$0xff] }
0x19b9   :  { %v920_v3 = vsub.f32 %v906_v24, %v918_v31  ;;  %v921_v32 = vmul.f32 %v919_v30, %v919_v30  ;;  %v1073_v31 = vld [vmem:[%s1993_s12 + $0x18] sm:$0xff] }
0x19bb   :  { %v923_v46 = vsel %vm909_vm9, %v921_v32, 0.0  ;;  %v922_v29 = vmul.f32 %v920_v3, %v920_v3 }
0x19bc   :  { %924 = vadd.xlane.f32.xlu0 %v923_v46 }
0x19bd   :  { %v926_v33 = vsel %vm909_vm9, %v922_v29, 0.0 }
0x19be   :  { %927 = vadd.xlane.f32.xlu1 %v926_v33 }
0x1a49   :  { %v925_v43 = vpop.xlane.xlu0 %924 }
0x1a4a   :  { %v929_v44 = vmul.f32 0.015625, %v925_v43 }
0x1a4b   :  { %v928_v45 = vpop.xlane.xlu1 %927 }
0x1a4c   :  { %v931_v47 = vadd.f32 1e-05, %v929_v44  ;;  %v930_v48 = vmul.f32 0.015625, %v928_v45 }
0x1a4e   :  { %1375 = vrsqrt.f32 %v931_v47  ;;  %v932_v49 = vadd.f32 1e-05, %v930_v48 }
0x1a50   :  { %1377 = vrsqrt.f32 %v932_v49 }
0x1a58   :  { %v1376_v50 = vpop.eup %1375 }
0x1a59   :  { %v935_v53 = vmul.f32 %v1376_v50, %v919_v30  ;;  %v1075_v30 = vpack.c.bf16 %v1071_v28, %v1070_v51 }
0x1a5a   :  { %v1378_v54 = vpop.eup %1377 }
0x1a5b   :  { %v943_v55 = vmul.f32 %v1163_v52, %v935_v53  ;;  %v936_v57 = vmul.f32 %v1378_v54, %v920_v3  ;;  %1317 = vmatpush3.bf16.msra.mxu0 %v1075_v30  ;;  %v1076_v3 = vpack.c.bf16 %v1073_v31, %v1072_v56 }
0x1a5c   :  { %1318 = vmatprep.subr.bf16.mxu0 %v1508_v1 }
0x1a5d   :  { %v944_v59 = vmul.f32 %v1163_v52, %v936_v57  ;;  %v951_v60 = vadd.f32 %v1164_v58, %v943_v55  ;;  %v1081_v57 = vshrl.u32 %v102_v34, 7 }
0x1a5f   :  { %v952_v61 = vadd.f32 %v1164_v58, %v944_v59  ;;  %1319 = vmatpush3.bf16.msra.mxu0 %v1076_v3  ;;  %v1082_v58 = vsub.s32 0, %v1081_v57 }
0x1a61   :  { %v961_v62 = vpack.c.bf16 %v952_v61, %v951_v60 }
0x1a63   :  { %1313 = vmatmul.mubr.msk.bf16.vlgmr.msra.gmra.mrb[24].mxu1 %vm909_vm9, %v961_v62 }
0x1b36   :  { %v1010_v0 = vpop.f32.mrb[24].mxu1 }
0x1b37   :  { %v1011_v2 = vadd.f32 %v1165_v63, %v1010_v0  ;;  %v1314_v5 = vpop.f32.mrb[25].mxu1 }
0x1b38   :  { %v1013_v7 = vpop.f32.mrb[26].mxu1 }
0x1b39   :  { %v1017_v8 = vmax.f32 %v1011_v2, 0.0  ;;  %v1014_v10 = vadd.f32 %v1165_v63, %v1013_v7  ;;  %v1315_v11 = vpop.f32.mrb[27].mxu1 }
0x1b3b   :  { %v1018_v12 = vmax.f32 %v1014_v10, 0.0  ;;  %v1019_v13 = vsel %vm203_vm7, %v1017_v8, 0.0 }
0x1b3c   :  { %1020 = vadd.xlane.f32.xlu0 %v1019_v13 }
0x1b3d   :  { %v1022_v15 = vsel %vm203_vm7, %v1018_v12, 0.0 }
0x1b3e   :  { %1023 = vadd.xlane.f32.xlu1 %v1022_v15 }
0x1bc9   :  { %v1021_v16 = vpop.xlane.xlu0 %1020 }
0x1bca   :  { %v1025_v17 = vmul.f32 0.03125, %v1021_v16 }
0x1bcb   :  { %v1024_v18 = vpop.xlane.xlu1 %1023 }
0x1bcc   :  { %v1027_v19 = vsub.f32 %v1017_v8, %v1025_v17  ;;  %v1026_v21 = vmul.f32 0.03125, %v1024_v18 }
0x1bce   :  { %v1028_v22 = vsub.f32 %v1018_v12, %v1026_v21  ;;  %v1029_v23 = vmul.f32 %v1027_v19, %v1027_v19 }
0x1bd0   :  { %v1031_v24 = vsel %vm203_vm7, %v1029_v23, 0.0  ;;  %v1030_v26 = vmul.f32 %v1028_v22, %v1028_v22 }
0x1bd1   :  { %1032 = vadd.xlane.f32.xlu0 %v1031_v24 }
0x1bd2   :  { %v1034_v27 = vsel %vm203_vm7, %v1030_v26, 0.0 }
0x1bd3   :  { %1035 = vadd.xlane.f32.xlu1 %v1034_v27 }
0x1c5e   :  { %v1033_v32 = vpop.xlane.xlu0 %1032 }
0x1c5f   :  { %v1037_v46 = vmul.f32 0.03125, %v1033_v32 }
0x1c60   :  { %v1036_v29 = vpop.xlane.xlu1 %1035 }
0x1c61   :  { %v1039_v33 = vadd.f32 1e-05, %v1037_v46  ;;  %v1038_v35 = vmul.f32 0.03125, %v1036_v29 }
0x1c63   :  { %1379 = vrsqrt.f32 %v1039_v33  ;;  %v1040_v36 = vadd.f32 1e-05, %v1038_v35 }
0x1c65   :  { %1381 = vrsqrt.f32 %v1040_v36 }
0x1c6d   :  { %v1380_v37 = vpop.eup %1379 }
0x1c6e   :  { %v1043_v25 = vmul.f32 %v1380_v37, %v1027_v19 }
0x1c6f   :  { %v1382_v38 = vpop.eup %1381 }
0x1c70   :  { %v1045_v6 = vmul.f32 %v1885_v4, %v1043_v25  ;;  %v1044_v39 = vmul.f32 %v1382_v38, %v1028_v22 }
0x1c72   :  { %v1047_v40 = vadd.f32 %v1891_v9, %v1045_v6  ;;  %v1046_v1 = vmul.f32 %v1885_v4, %v1044_v39  ;;  %v1077_v4 = vld [vmem:[%s1994_s13] sm:$0x1] }
0x1c74   :  { %v1050_v14 = vrot.slane %v1047_v40, 2  ;;  %v1053_v42 = vrot.slane %v1047_v40, 4  ;;  %v1048_v20 = vadd.f32 %v1891_v9, %v1046_v1  ;;  %v1056_v44 = vrot.slane %v1047_v40, 6 }
0x1c75   :  { %v1078_v9 = vmul.f32 8.0, %v1077_v4 }
0x1c76   :  { %v1052_v41 = vadd.f32 %v1050_v14, %v1047_v40  ;;  %v1061_v48 = vrot.slane %v1048_v20, 2  ;;  %v1064_v50 = vrot.slane %v1048_v20, 4  ;;  %v1067_v53 = vrot.slane %v1048_v20, 6 }
0x1c77   :  { %v1083_v59 = vrot.slane %v1078_v9, %v1082_v58 }
0x1c78   :  { %v1055_v43 = vadd.f32 %v1053_v42, %v1052_v41 }
0x1c7a   :  { %v1058_v45 = vadd.f32 %v1056_v44, %v1055_v43 }
0x1c7c   :  { %v1059_v47 = vadd.f32 %v1058_v45, %v1048_v20 }
0x1c7e   :  { %v1063_v49 = vadd.f32 %v1061_v48, %v1059_v47 }
0x1c80   :  { %v1066_v52 = vadd.f32 %v1064_v50, %v1063_v49 }
0x1c82   :  { %v1069_v54 = vadd.f32 %v1067_v53, %v1066_v52 }
0x1c84   :  { %v1074_v55 = vpack.c.bf16 %v1069_v54, %v1069_v54 }
0x1c86   :  { %1321 = vmatmul.mubr.msk.bf16.vlgmr.msra.gmra.mrb[16].mxu0 %vm203_vm7, %v1074_v55 }
0x1d59   :  { %v1122_v60 = vpop.f32.mrb[16].mxu0 }
0x1d5a   :  { %v1123_v61 = vadd.f32 %v1122_v60, %v1083_v59  ;;  %v1322_v62 = vpop.f32.mrb[17].mxu0 }
0x1d5b   :  { %v1125_v63 = vpop.f32.mrb[18].mxu0 }
0x1d5c   :  { %v1323_v0 = vpop.f32.mrb[19].mxu0  ;;  %1129 = vst.msk [vmem:[#allocation12] sm:$0x3] %vm1128_vm10, %v1123_v61 }
0x1d5d   :  { %1482 = shalt.err (!%p1479_p8)
}
0x1d5e   :  { %s1483_s8 = scalar_lea.hbm %s1995_s14, 32 }
0x1d5f   :  { %p1484_p9 = scmp.ne.s32.totalorder %s1995_s14, %s1483_s8  ;;  %p1487_p10 = scmp.lt.u32.totalorder %s1483_s8, %s1995_s14 }
0x1d61   :  { %p1489_p11 = pnand %p1487_p10, %p1484_p9 }
0x1d63   :  { %1492 = shalt.err (!%p1489_p11)
}
0x1d64   :  { %1139 = dma.vmem_to_hbm [thread:$0]  %s1137_s21, 32, %s1995_s14, [#allocation6]  }
0x1d65   :  { %1499 = dma.done.wait [#allocation6], 32  }
0x1d66   :  { %1500 = vsyncadd [#allocation6], 4294967264 }
0x1d67   :  { %1143 = vsyncpa [#allocation5], 1 }
0x1d68   :  { %1144 = vsyncpa [#allocation8], 1 }
0x1d69   :  { %1145 = vsyncpa [#allocation11], 1 }
0x1d6a   :  { %1146 = vsyncpa [#allocation6], 1 }

</bundles_post_ra>
